<compile_context>
chip_gen: v6e
topology: v6e:2x2x1
jax: 0.10.0
libtpu: 0.0.40
codegen_flags: <defaults>
</compile_context>

<pallas_src>
import math

import jax
import jax.numpy as jnp
from jax import lax
from jax.experimental import pallas as pl
from jax.experimental.pallas import tpu as pltpu

# ---- module-consistent config -------------------------------------------------------------
BATCH = 2
SEQ = 8
INPUT_DIM = 6
OUTPUT_DIM = 2
D_MODEL = 32
NHEAD = 4
HEAD_DIM = D_MODEL // NHEAD
NUM_LAYERS = 2
DIM_FF = 64
D_HALF = D_MODEL // 2
LN_EPS = 1e-5
ROWS = BATCH * SEQ            # 16 rows — whole batch as one slab
X_PAD = 8                     # x columns padded 6 -> 8 (one full sublane group)

# ---- const slab row offsets (every field at lane 0, 8-aligned row bands) -------------------
_C_PE = 0                     # (ROWS, D_MODEL)  positional table tiled over batch
_C_MASK = _C_PE + ROWS        # (ROWS, ROWS)     additive block-diagonal batch mask
_C_WIN = _C_MASK + ROWS       # (X_PAD, D_MODEL) input projection weight (rows 6:8 zero)
_C_SEL = _C_WIN + X_PAD       # (BATCH, ROWS)    one-hot last-timestep selector
_C_WP1 = _C_SEL + 8           # (D_MODEL, D_HALF)
_C_WP2 = _C_WP1 + D_MODEL     # (D_HALF, OUTPUT_DIM)
_C_BIN = _C_WP2 + D_HALF      # single bias rows
_C_BP1 = _C_BIN + 1
_C_BP2 = _C_BP1 + 1
C_ROWS = 104
C_LANES = 32

# ---- per-layer slab row offsets -------------------------------------------------------------
_L_WQ = 0                     # (D_MODEL, D_MODEL)  scale-folded Wq
_L_WK = _L_WQ + D_MODEL       # (D_MODEL, D_MODEL)
_L_WV = _L_WK + D_MODEL       # (D_MODEL, D_MODEL)
_L_WO = _L_WV + D_MODEL       # (D_MODEL, D_MODEL)  rows h*8:(h+1)*8 = head h slice
_L_W1 = _L_WO + D_MODEL       # (D_MODEL, DIM_FF)
_L_W2 = _L_W1 + D_MODEL       # (DIM_FF, D_MODEL)
_L_BQ = _L_W2 + DIM_FF        # single bias / LN rows
_L_BK = _L_BQ + 1
_L_BV = _L_BK + 1
_L_BO = _L_BV + 1
_L_B1 = _L_BO + 1
_L_B2 = _L_B1 + 1
_L_LN1G = _L_B2 + 1
_L_LN1B = _L_LN1G + 1
_L_LN2G = _L_LN1B + 1
_L_LN2B = _L_LN2G + 1
L_ROWS = 240
L_LANES = DIM_FF              # 64


# ---- math helpers (shared by kernel and pure-JAX reference) --------------------------------
def _erf(x):
    # Abramowitz & Stegun 7.1.26 polynomial erf (|err| < 1.5e-7).
    # TODO(synk): swap for lax.erf if/when erf_p gets a Pallas-TPU lowering.
    a1, a2, a3, a4, a5 = 0.254829592, -0.284496736, 1.421413741, -1.453152027, 1.061405429
    p = 0.3275911
    z = jnp.abs(x)
    t = 1.0 / (1.0 + p * z)
    poly = ((((a5 * t + a4) * t + a3) * t + a2) * t + a1) * t
    y = 1.0 - poly * jnp.exp(-z * z)
    return jnp.where(x >= 0, y, -y)


def _gelu(x):
    # exact (erf-based) GELU == torch.nn.GELU() default / F.gelu
    return 0.5 * x * (1.0 + _erf(x * (1.0 / math.sqrt(2.0))))


def _layer_norm(x, gamma, beta):
    mu = jnp.mean(x, axis=-1, keepdims=True)
    var = jnp.mean((x - mu) ** 2, axis=-1, keepdims=True)
    return (x - mu) * lax.rsqrt(var + LN_EPS) * gamma + beta


# ---- the Pallas kernel ----------------------------------------------------------------------
def transformer_kernel(x_ref, c_ref, w_ref, out_ref):
    x = x_ref[...]                                               # (ROWS, X_PAD), cols 6:8 zero
    w_in = c_ref[_C_WIN:_C_WIN + X_PAD, 0:D_MODEL]               # (8, 32)
    b_in = c_ref[_C_BIN:_C_BIN + 1, 0:D_MODEL]                   # (1, 32)
    pe = c_ref[_C_PE:_C_PE + ROWS, 0:D_MODEL]                    # (16, 32)
    mask = c_ref[_C_MASK:_C_MASK + ROWS, 0:ROWS]                 # (16, 16) additive mask

    # input projection + positional table (pe already tiled over batch rows)
    h = jnp.dot(x, w_in, preferred_element_type=jnp.float32) + b_in + pe

    for l in range(NUM_LAYERS):                                  # static unroll
        wq = w_ref[l, _L_WQ:_L_WQ + D_MODEL, 0:D_MODEL]          # scale folded in
        wk = w_ref[l, _L_WK:_L_WK + D_MODEL, 0:D_MODEL]
        wv = w_ref[l, _L_WV:_L_WV + D_MODEL, 0:D_MODEL]
        w1 = w_ref[l, _L_W1:_L_W1 + D_MODEL, 0:DIM_FF]
        w2 = w_ref[l, _L_W2:_L_W2 + DIM_FF, 0:D_MODEL]
        bq = w_ref[l, _L_BQ:_L_BQ + 1, 0:D_MODEL]
        bk = w_ref[l, _L_BK:_L_BK + 1, 0:D_MODEL]
        bv = w_ref[l, _L_BV:_L_BV + 1, 0:D_MODEL]
        bo = w_ref[l, _L_BO:_L_BO + 1, 0:D_MODEL]
        b1 = w_ref[l, _L_B1:_L_B1 + 1, 0:DIM_FF]
        b2 = w_ref[l, _L_B2:_L_B2 + 1, 0:D_MODEL]
        ln1g = w_ref[l, _L_LN1G:_L_LN1G + 1, 0:D_MODEL]
        ln1b = w_ref[l, _L_LN1B:_L_LN1B + 1, 0:D_MODEL]
        ln2g = w_ref[l, _L_LN2G:_L_LN2G + 1, 0:D_MODEL]
        ln2b = w_ref[l, _L_LN2B:_L_LN2B + 1, 0:D_MODEL]

        # separate Q/K/V matmuls (no lane-offset slices of a fused qkv value)
        q = jnp.dot(h, wq, preferred_element_type=jnp.float32) + bq   # (16, 32), pre-scaled
        k = jnp.dot(h, wk, preferred_element_type=jnp.float32) + bk
        v = jnp.dot(h, wv, preferred_element_type=jnp.float32) + bv

        # per-head 2-D attention; head merge folded into row slices of Wo
        attn = bo
        for hh in range(NHEAD):
            lo = hh * HEAD_DIM
            qh = q[:, lo:lo + HEAD_DIM]                          # (16, 8)
            kh = k[:, lo:lo + HEAD_DIM]
            vh = v[:, lo:lo + HEAD_DIM]
            s = lax.dot_general(qh, kh, (((1,), (1,)), ((), ())),
                                preferred_element_type=jnp.float32)   # (16, 16)
            s = s + mask                                         # forbid cross-batch attention
            s = s - jnp.max(s, axis=-1, keepdims=True)
            p = jnp.exp(s)
            p = p * pl.reciprocal(jnp.sum(p, axis=-1, keepdims=True), approx=True)
            oh = jnp.dot(p, vh, preferred_element_type=jnp.float32)   # (16, 8)
            woh = w_ref[l, _L_WO + lo:_L_WO + lo + HEAD_DIM, 0:D_MODEL]  # (8, 32) ref slice
            attn = attn + jnp.dot(oh, woh, preferred_element_type=jnp.float32)

        h = _layer_norm(h + attn, ln1g, ln1b)

        ff = jnp.dot(h, w1, preferred_element_type=jnp.float32) + b1
        ff = _gelu(ff)
        ff = jnp.dot(ff, w2, preferred_element_type=jnp.float32) + b2
        h = _layer_norm(h + ff, ln2g, ln2b)

    # last timestep per batch item via one-hot selection matmul, then the output head
    sel = c_ref[_C_SEL:_C_SEL + BATCH, 0:ROWS]                   # (2, 16)
    last = jnp.dot(sel, h, preferred_element_type=jnp.float32)   # (2, 32)
    wp1 = c_ref[_C_WP1:_C_WP1 + D_MODEL, 0:D_HALF]
    wp2 = c_ref[_C_WP2:_C_WP2 + D_HALF, 0:OUTPUT_DIM]
    bp1 = c_ref[_C_BP1:_C_BP1 + 1, 0:D_HALF]
    bp2 = c_ref[_C_BP2:_C_BP2 + 1, 0:OUTPUT_DIM]
    p1 = _gelu(jnp.dot(last, wp1, preferred_element_type=jnp.float32) + bp1)
    out_ref[...] = jnp.dot(p1, wp2, preferred_element_type=jnp.float32) + bp2


# ---- packing + wrapper ----------------------------------------------------------------------
def pack_params(params):
    scale = 1.0 / math.sqrt(HEAD_DIM)

    # --- const slab (pe, mask, selector, input projection, output head) ---
    C = jnp.zeros((C_ROWS, C_LANES), jnp.float32)
    C = C.at[_C_PE:_C_PE + ROWS, 0:D_MODEL].set(jnp.tile(params["pe"], (BATCH, 1)))
    rb = jnp.arange(ROWS, dtype=jnp.int32) // SEQ
    mask = jnp.where(rb[:, None] == rb[None, :], 0.0, -1e9).astype(jnp.float32)
    C = C.at[_C_MASK:_C_MASK + ROWS, 0:ROWS].set(mask)
    C = C.at[_C_WIN:_C_WIN + INPUT_DIM, 0:D_MODEL].set(params["w_in"])
    sel = jnp.zeros((BATCH, ROWS), jnp.float32)
    sel = sel.at[jnp.arange(BATCH), (jnp.arange(BATCH) + 1) * SEQ - 1].set(1.0)
    C = C.at[_C_SEL:_C_SEL + BATCH, 0:ROWS].set(sel)
    C = C.at[_C_WP1:_C_WP1 + D_MODEL, 0:D_HALF].set(params["wp1"])
    C = C.at[_C_WP2:_C_WP2 + D_HALF, 0:OUTPUT_DIM].set(params["wp2"])
    C = C.at[_C_BIN, 0:D_MODEL].set(params["b_in"][0])
    C = C.at[_C_BP1, 0:D_HALF].set(params["bp1"][0])
    C = C.at[_C_BP2, 0:OUTPUT_DIM].set(params["bp2"][0])

    # --- per-layer slab; fold 1/sqrt(head_dim) into the Q weights AND bias ---
    wq = params["wqkv"][:, :, 0:D_MODEL] * scale
    wk = params["wqkv"][:, :, D_MODEL:2 * D_MODEL]
    wv = params["wqkv"][:, :, 2 * D_MODEL:3 * D_MODEL]
    bq = params["bqkv"][:, 0, 0:D_MODEL] * scale
    bk = params["bqkv"][:, 0, D_MODEL:2 * D_MODEL]
    bv = params["bqkv"][:, 0, 2 * D_MODEL:3 * D_MODEL]

    L = jnp.zeros((NUM_LAYERS, L_ROWS, L_LANES), jnp.float32)
    L = L.at[:, _L_WQ:_L_WQ + D_MODEL, 0:D_MODEL].set(wq)
    L = L.at[:, _L_WK:_L_WK + D_MODEL, 0:D_MODEL].set(wk)
    L = L.at[:, _L_WV:_L_WV + D_MODEL, 0:D_MODEL].set(wv)
    L = L.at[:, _L_WO:_L_WO + D_MODEL, 0:D_MODEL].set(params["wo"])
    L = L.at[:, _L_W1:_L_W1 + D_MODEL, 0:DIM_FF].set(params["w1"])
    L = L.at[:, _L_W2:_L_W2 + DIM_FF, 0:D_MODEL].set(params["w2"])
    L = L.at[:, _L_BQ, 0:D_MODEL].set(bq)
    L = L.at[:, _L_BK, 0:D_MODEL].set(bk)
    L = L.at[:, _L_BV, 0:D_MODEL].set(bv)
    L = L.at[:, _L_BO, 0:D_MODEL].set(params["bo"][:, 0, :])
    L = L.at[:, _L_B1, 0:DIM_FF].set(params["b1"][:, 0, :])
    L = L.at[:, _L_B2, 0:D_MODEL].set(params["b2"][:, 0, :])
    L = L.at[:, _L_LN1G, 0:D_MODEL].set(params["ln1_g"][:, 0, :])
    L = L.at[:, _L_LN1B, 0:D_MODEL].set(params["ln1_b"][:, 0, :])
    L = L.at[:, _L_LN2G, 0:D_MODEL].set(params["ln2_g"][:, 0, :])
    L = L.at[:, _L_LN2B, 0:D_MODEL].set(params["ln2_b"][:, 0, :])
    return {"consts": C, "layers": L}


def transformer_forward(x, packed):
    # pad the K dimension 6 -> 8 with zero columns (w_in rows 6:8 are zero too)
    x2 = jnp.pad(x.reshape(ROWS, INPUT_DIM), ((0, 0), (0, X_PAD - INPUT_DIM)))
    vmem = pl.BlockSpec(memory_space=pltpu.MemorySpace.VMEM)
    # gridless single-shot call: no pipeline prologue, no double buffering
    out = pl.pallas_call(
        transformer_kernel,
        out_shape=jax.ShapeDtypeStruct((BATCH, OUTPUT_DIM), jnp.float32),
        in_specs=[vmem, vmem, vmem],
        out_specs=vmem,
    )(x2, packed["consts"], packed["layers"])
    return out


# ---- pure-JAX reference (same math, unpacked params) ----------------------------------------
def reference_forward(x, params):
    h = x @ params["w_in"] + params["b_in"] + params["pe"][None]
    B, S, _ = h.shape
    for l in range(NUM_LAYERS):
        qkv = h @ params["wqkv"][l] + params["bqkv"][l]
        q, k, v = (qkv[..., :D_MODEL], qkv[..., D_MODEL:2 * D_MODEL], qkv[..., 2 * D_MODEL:])
        qh = q.reshape(B, S, NHEAD, HEAD_DIM).transpose(0, 2, 1, 3) / math.sqrt(HEAD_DIM)
        kh = k.reshape(B, S, NHEAD, HEAD_DIM).transpose(0, 2, 1, 3)
        vh = v.reshape(B, S, NHEAD, HEAD_DIM).transpose(0, 2, 1, 3)
        s = jnp.einsum("bhqd,bhkd->bhqk", qh, kh)
        p = jax.nn.softmax(s, axis=-1)
        o = jnp.einsum("bhqk,bhkd->bhqd", p, vh).transpose(0, 2, 1, 3).reshape(B, S, D_MODEL)
        attn = o @ params["wo"][l] + params["bo"][l]
        h = _layer_norm(h + attn, params["ln1_g"][l], params["ln1_b"][l])
        ff = _gelu(h @ params["w1"][l] + params["b1"][l]) @ params["w2"][l] + params["b2"][l]
        h = _layer_norm(h + ff, params["ln2_g"][l], params["ln2_b"][l])
    last = h[:, -1, :]
    p1 = _gelu(last @ params["wp1"] + params["bp1"])
    return p1 @ params["wp2"] + params["bp2"]


# ---- deterministic parameter / input construction -------------------------------------------
def sinusoidal_pe(seq_len, d_model):
    position = jnp.arange(seq_len, dtype=jnp.float32)[:, None]
    div_term = jnp.exp(jnp.arange(0, d_model, 2, dtype=jnp.float32) *
                       (-math.log(10000.0) / d_model))
    pe = jnp.zeros((seq_len, d_model), jnp.float32)
    pe = pe.at[:, 0::2].set(jnp.sin(position * div_term))
    pe = pe.at[:, 1::2].set(jnp.cos(position * div_term))
    return pe


def init_params(key):
    ks = iter(jax.random.split(key, 32))
    n = lambda shape, s=0.05: s * jax.random.normal(next(ks), shape, dtype=jnp.float32)
    return {
        "pe": sinusoidal_pe(SEQ, D_MODEL),
        # weights stored as (in, out) so the kernel does y = x @ W + b  (== torch Linear)
        "w_in": n((INPUT_DIM, D_MODEL)), "b_in": n((1, D_MODEL)),
        "wqkv": n((NUM_LAYERS, D_MODEL, 3 * D_MODEL)), "bqkv": n((NUM_LAYERS, 1, 3 * D_MODEL)),
        "wo": n((NUM_LAYERS, D_MODEL, D_MODEL)), "bo": n((NUM_LAYERS, 1, D_MODEL)),
        "ln1_g": jnp.ones((NUM_LAYERS, 1, D_MODEL), jnp.float32),
        "ln1_b": jnp.zeros((NUM_LAYERS, 1, D_MODEL), jnp.float32),
        "w1": n((NUM_LAYERS, D_MODEL, DIM_FF)), "b1": n((NUM_LAYERS, 1, DIM_FF)),
        "w2": n((NUM_LAYERS, DIM_FF, D_MODEL)), "b2": n((NUM_LAYERS, 1, D_MODEL)),
        "ln2_g": jnp.ones((NUM_LAYERS, 1, D_MODEL), jnp.float32),
        "ln2_b": jnp.zeros((NUM_LAYERS, 1, D_MODEL), jnp.float32),
        "wp1": n((D_MODEL, D_HALF)), "bp1": n((1, D_HALF)),
        "wp2": n((D_HALF, OUTPUT_DIM)), "bp2": n((1, OUTPUT_DIM)),
    }


if __name__ == "__main__":
    key = jax.random.PRNGKey(0)
    k_x, k_p = jax.random.split(key)
    x = jax.random.normal(k_x, (BATCH, SEQ, INPUT_DIM), dtype=jnp.float32)
    params = init_params(k_p)
    packed = pack_params(params)

    out = jax.block_until_ready(transformer_forward(x, packed))
    ref = jax.block_until_ready(reference_forward(x, params))

    assert out.shape == (BATCH, OUTPUT_DIM)
    if not jnp.allclose(out, ref, rtol=1e-3, atol=1e-3):
        raise AssertionError(f"mismatch vs reference:\n{out}\n{ref}")

    print("KERNEL_OK")
</pallas_src>

<mosaic_0001>
module attributes {stable_mosaic.version = 11 : i64} {
  func.func @transformer_kernel(%arg0: memref<16x8xf32, #tpu.memory_space<vmem>>, %arg1: memref<104x32xf32, #tpu.memory_space<vmem>>, %arg2: memref<2x240x64xf32, #tpu.memory_space<vmem>>, %arg3: memref<2x2xf32, #tpu.memory_space<vmem>>) attributes {dimension_semantics = [], scalar_prefetch = 0 : i64, scratch_operands = 0 : i64, tpu.core_type = #tpu.core_type<tc>} {
    %c0 = arith.constant 0 : index
    %c0_0 = arith.constant 0 : index
    %0 = vector.load %arg0[%c0, %c0_0] : memref<16x8xf32, #tpu.memory_space<vmem>>, vector<16x8xf32>
    %c32 = arith.constant 32 : index
    %c0_1 = arith.constant 0 : index
    %1 = vector.load %arg1[%c32, %c0_1] : memref<104x32xf32, #tpu.memory_space<vmem>>, vector<8x32xf32>
    %c96 = arith.constant 96 : index
    %c0_2 = arith.constant 0 : index
    %2 = vector.load %arg1[%c96, %c0_2] : memref<104x32xf32, #tpu.memory_space<vmem>>, vector<1x32xf32>
    %c0_3 = arith.constant 0 : index
    %c0_4 = arith.constant 0 : index
    %3 = vector.load %arg1[%c0_3, %c0_4] : memref<104x32xf32, #tpu.memory_space<vmem>>, vector<16x32xf32>
    %c16 = arith.constant 16 : index
    %c0_5 = arith.constant 0 : index
    %4 = vector.load %arg1[%c16, %c0_5] : memref<104x32xf32, #tpu.memory_space<vmem>>, vector<16x16xf32>
    %cst = arith.constant dense<0.000000e+00> : vector<16x32xf32>
    %5 = tpu.matmul %0, %1, %cst {dimension_numbers = #tpu.dot_dimension_numbers<[1], [0], [0], [1], [0, 0, 1, 1], [], []>} : vector<16x8xf32>, vector<8x32xf32>, vector<16x32xf32> -> vector<16x32xf32>
    %6 = vector.broadcast %2 : vector<1x32xf32> to vector<16x32xf32>
    %7 = arith.addf %5, %6 : vector<16x32xf32>
    %8 = arith.addf %7, %3 : vector<16x32xf32>
    %c0_6 = arith.constant 0 : index
    %c0_7 = arith.constant 0 : index
    %c0_8 = arith.constant 0 : index
    %9 = vector.load %arg2[%c0_6, %c0_7, %c0_8] : memref<2x240x64xf32, #tpu.memory_space<vmem>>, vector<1x32x32xf32>
    %10 = vector.shape_cast %9 : vector<1x32x32xf32> to vector<32x32xf32>
    %c0_9 = arith.constant 0 : index
    %c32_10 = arith.constant 32 : index
    %c0_11 = arith.constant 0 : index
    %11 = vector.load %arg2[%c0_9, %c32_10, %c0_11] : memref<2x240x64xf32, #tpu.memory_space<vmem>>, vector<1x32x32xf32>
    %12 = vector.shape_cast %11 : vector<1x32x32xf32> to vector<32x32xf32>
    %c0_12 = arith.constant 0 : index
    %c64 = arith.constant 64 : index
    %c0_13 = arith.constant 0 : index
    %13 = vector.load %arg2[%c0_12, %c64, %c0_13] : memref<2x240x64xf32, #tpu.memory_space<vmem>>, vector<1x32x32xf32>
    %14 = vector.shape_cast %13 : vector<1x32x32xf32> to vector<32x32xf32>
    %c0_14 = arith.constant 0 : index
    %c128 = arith.constant 128 : index
    %c0_15 = arith.constant 0 : index
    %15 = vector.load %arg2[%c0_14, %c128, %c0_15] : memref<2x240x64xf32, #tpu.memory_space<vmem>>, vector<1x32x64xf32>
    %16 = vector.shape_cast %15 : vector<1x32x64xf32> to vector<32x64xf32>
    %c0_16 = arith.constant 0 : index
    %c160 = arith.constant 160 : index
    %c0_17 = arith.constant 0 : index
    %17 = vector.load %arg2[%c0_16, %c160, %c0_17] : memref<2x240x64xf32, #tpu.memory_space<vmem>>, vector<1x64x32xf32>
    %18 = vector.shape_cast %17 : vector<1x64x32xf32> to vector<64x32xf32>
    %c0_18 = arith.constant 0 : index
    %c224 = arith.constant 224 : index
    %c0_19 = arith.constant 0 : index
    %19 = vector.load %arg2[%c0_18, %c224, %c0_19] : memref<2x240x64xf32, #tpu.memory_space<vmem>>, vector<1x1x32xf32>
    %20 = vector.shape_cast %19 : vector<1x1x32xf32> to vector<1x32xf32>
    %c0_20 = arith.constant 0 : index
    %c225 = arith.constant 225 : index
    %c0_21 = arith.constant 0 : index
    %21 = vector.load %arg2[%c0_20, %c225, %c0_21] : memref<2x240x64xf32, #tpu.memory_space<vmem>>, vector<1x1x32xf32>
    %22 = vector.shape_cast %21 : vector<1x1x32xf32> to vector<1x32xf32>
    %c0_22 = arith.constant 0 : index
    %c226 = arith.constant 226 : index
    %c0_23 = arith.constant 0 : index
    %23 = vector.load %arg2[%c0_22, %c226, %c0_23] : memref<2x240x64xf32, #tpu.memory_space<vmem>>, vector<1x1x32xf32>
    %24 = vector.shape_cast %23 : vector<1x1x32xf32> to vector<1x32xf32>
    %c0_24 = arith.constant 0 : index
    %c227 = arith.constant 227 : index
    %c0_25 = arith.constant 0 : index
    %25 = vector.load %arg2[%c0_24, %c227, %c0_25] : memref<2x240x64xf32, #tpu.memory_space<vmem>>, vector<1x1x32xf32>
    %26 = vector.shape_cast %25 : vector<1x1x32xf32> to vector<1x32xf32>
    %c0_26 = arith.constant 0 : index
    %c228 = arith.constant 228 : index
    %c0_27 = arith.constant 0 : index
    %27 = vector.load %arg2[%c0_26, %c228, %c0_27] : memref<2x240x64xf32, #tpu.memory_space<vmem>>, vector<1x1x64xf32>
    %28 = vector.shape_cast %27 : vector<1x1x64xf32> to vector<1x64xf32>
    %c0_28 = arith.constant 0 : index
    %c229 = arith.constant 229 : index
    %c0_29 = arith.constant 0 : index
    %29 = vector.load %arg2[%c0_28, %c229, %c0_29] : memref<2x240x64xf32, #tpu.memory_space<vmem>>, vector<1x1x32xf32>
    %30 = vector.shape_cast %29 : vector<1x1x32xf32> to vector<1x32xf32>
    %c0_30 = arith.constant 0 : index
    %c230 = arith.constant 230 : index
    %c0_31 = arith.constant 0 : index
    %31 = vector.load %arg2[%c0_30, %c230, %c0_31] : memref<2x240x64xf32, #tpu.memory_space<vmem>>, vector<1x1x32xf32>
    %32 = vector.shape_cast %31 : vector<1x1x32xf32> to vector<1x32xf32>
    %c0_32 = arith.constant 0 : index
    %c231 = arith.constant 231 : index
    %c0_33 = arith.constant 0 : index
    %33 = vector.load %arg2[%c0_32, %c231, %c0_33] : memref<2x240x64xf32, #tpu.memory_space<vmem>>, vector<1x1x32xf32>
    %34 = vector.shape_cast %33 : vector<1x1x32xf32> to vector<1x32xf32>
    %c0_34 = arith.constant 0 : index
    %c232 = arith.constant 232 : index
    %c0_35 = arith.constant 0 : index
    %35 = vector.load %arg2[%c0_34, %c232, %c0_35] : memref<2x240x64xf32, #tpu.memory_space<vmem>>, vector<1x1x32xf32>
    %36 = vector.shape_cast %35 : vector<1x1x32xf32> to vector<1x32xf32>
    %c0_36 = arith.constant 0 : index
    %c233 = arith.constant 233 : index
    %c0_37 = arith.constant 0 : index
    %37 = vector.load %arg2[%c0_36, %c233, %c0_37] : memref<2x240x64xf32, #tpu.memory_space<vmem>>, vector<1x1x32xf32>
    %38 = vector.shape_cast %37 : vector<1x1x32xf32> to vector<1x32xf32>
    %cst_38 = arith.constant dense<0.000000e+00> : vector<16x32xf32>
    %39 = tpu.matmul %8, %10, %cst_38 {dimension_numbers = #tpu.dot_dimension_numbers<[1], [0], [0], [1], [0, 0, 1, 1], [], []>} : vector<16x32xf32>, vector<32x32xf32>, vector<16x32xf32> -> vector<16x32xf32>
    %40 = vector.broadcast %20 : vector<1x32xf32> to vector<16x32xf32>
    %41 = arith.addf %39, %40 : vector<16x32xf32>
    %cst_39 = arith.constant dense<0.000000e+00> : vector<16x32xf32>
    %42 = tpu.matmul %8, %12, %cst_39 {dimension_numbers = #tpu.dot_dimension_numbers<[1], [0], [0], [1], [0, 0, 1, 1], [], []>} : vector<16x32xf32>, vector<32x32xf32>, vector<16x32xf32> -> vector<16x32xf32>
    %43 = vector.broadcast %22 : vector<1x32xf32> to vector<16x32xf32>
    %44 = arith.addf %42, %43 : vector<16x32xf32>
    %cst_40 = arith.constant dense<0.000000e+00> : vector<16x32xf32>
    %45 = tpu.matmul %8, %14, %cst_40 {dimension_numbers = #tpu.dot_dimension_numbers<[1], [0], [0], [1], [0, 0, 1, 1], [], []>} : vector<16x32xf32>, vector<32x32xf32>, vector<16x32xf32> -> vector<16x32xf32>
    %46 = vector.broadcast %24 : vector<1x32xf32> to vector<16x32xf32>
    %47 = arith.addf %45, %46 : vector<16x32xf32>
    %48 = vector.extract_strided_slice %41 {offsets = [0, 0], sizes = [16, 8], strides = [1, 1]} : vector<16x32xf32> to vector<16x8xf32>
    %49 = vector.extract_strided_slice %44 {offsets = [0, 0], sizes = [16, 8], strides = [1, 1]} : vector<16x32xf32> to vector<16x8xf32>
    %50 = vector.extract_strided_slice %47 {offsets = [0, 0], sizes = [16, 8], strides = [1, 1]} : vector<16x32xf32> to vector<16x8xf32>
    %cst_41 = arith.constant dense<0.000000e+00> : vector<16x16xf32>
    %51 = tpu.matmul %48, %49, %cst_41 {dimension_numbers = #tpu.dot_dimension_numbers<[1], [1], [0], [0], [0, 0, 1, 0], [], []>} : vector<16x8xf32>, vector<16x8xf32>, vector<16x16xf32> -> vector<16x16xf32>
    %52 = arith.addf %51, %4 : vector<16x16xf32>
    %cst_42 = arith.constant dense<0xFF800000> : vector<16xf32>
    %53 = vector.multi_reduction <maximumf>, %52, %cst_42 [1] : vector<16x16xf32> to vector<16xf32>
    %54 = vector.shape_cast %53 : vector<16xf32> to vector<16x1xf32>
    %55 = vector.broadcast %54 : vector<16x1xf32> to vector<16x16xf32>
    %56 = arith.subf %52, %55 : vector<16x16xf32>
    %57 = math.exp %56 : vector<16x16xf32>
    %cst_43 = arith.constant dense<0.000000e+00> : vector<16xf32>
    %58 = vector.multi_reduction <add>, %57, %cst_43 [1] : vector<16x16xf32> to vector<16xf32>
    %59 = vector.shape_cast %58 : vector<16xf32> to vector<16x1xf32>
    %60 = tpu.reciprocal %59 {approx = true} : vector<16x1xf32> -> vector<16x1xf32>
    %61 = vector.broadcast %60 : vector<16x1xf32> to vector<16x16xf32>
    %62 = arith.mulf %57, %61 : vector<16x16xf32>
    %cst_44 = arith.constant dense<0.000000e+00> : vector<16x8xf32>
    %63 = tpu.matmul %62, %50, %cst_44 {dimension_numbers = #tpu.dot_dimension_numbers<[1], [0], [0], [1], [0, 0, 1, 1], [], []>} : vector<16x16xf32>, vector<16x8xf32>, vector<16x8xf32> -> vector<16x8xf32>
    %c0_45 = arith.constant 0 : index
    %c96_46 = arith.constant 96 : index
    %c0_47 = arith.constant 0 : index
    %64 = vector.load %arg2[%c0_45, %c96_46, %c0_47] : memref<2x240x64xf32, #tpu.memory_space<vmem>>, vector<1x8x32xf32>
    %65 = vector.shape_cast %64 : vector<1x8x32xf32> to vector<8x32xf32>
    %cst_48 = arith.constant dense<0.000000e+00> : vector<16x32xf32>
    %66 = tpu.matmul %63, %65, %cst_48 {dimension_numbers = #tpu.dot_dimension_numbers<[1], [0], [0], [1], [0, 0, 1, 1], [], []>} : vector<16x8xf32>, vector<8x32xf32>, vector<16x32xf32> -> vector<16x32xf32>
    %67 = vector.broadcast %26 : vector<1x32xf32> to vector<16x32xf32>
    %68 = arith.addf %67, %66 : vector<16x32xf32>
    %69 = vector.extract_strided_slice %41 {offsets = [0, 8], sizes = [16, 8], strides = [1, 1]} : vector<16x32xf32> to vector<16x8xf32>
    %70 = vector.extract_strided_slice %44 {offsets = [0, 8], sizes = [16, 8], strides = [1, 1]} : vector<16x32xf32> to vector<16x8xf32>
    %71 = vector.extract_strided_slice %47 {offsets = [0, 8], sizes = [16, 8], strides = [1, 1]} : vector<16x32xf32> to vector<16x8xf32>
    %cst_49 = arith.constant dense<0.000000e+00> : vector<16x16xf32>
    %72 = tpu.matmul %69, %70, %cst_49 {dimension_numbers = #tpu.dot_dimension_numbers<[1], [1], [0], [0], [0, 0, 1, 0], [], []>} : vector<16x8xf32>, vector<16x8xf32>, vector<16x16xf32> -> vector<16x16xf32>
    %73 = arith.addf %72, %4 : vector<16x16xf32>
    %cst_50 = arith.constant dense<0xFF800000> : vector<16xf32>
    %74 = vector.multi_reduction <maximumf>, %73, %cst_50 [1] : vector<16x16xf32> to vector<16xf32>
    %75 = vector.shape_cast %74 : vector<16xf32> to vector<16x1xf32>
    %76 = vector.broadcast %75 : vector<16x1xf32> to vector<16x16xf32>
    %77 = arith.subf %73, %76 : vector<16x16xf32>
    %78 = math.exp %77 : vector<16x16xf32>
    %cst_51 = arith.constant dense<0.000000e+00> : vector<16xf32>
    %79 = vector.multi_reduction <add>, %78, %cst_51 [1] : vector<16x16xf32> to vector<16xf32>
    %80 = vector.shape_cast %79 : vector<16xf32> to vector<16x1xf32>
    %81 = tpu.reciprocal %80 {approx = true} : vector<16x1xf32> -> vector<16x1xf32>
    %82 = vector.broadcast %81 : vector<16x1xf32> to vector<16x16xf32>
    %83 = arith.mulf %78, %82 : vector<16x16xf32>
    %cst_52 = arith.constant dense<0.000000e+00> : vector<16x8xf32>
    %84 = tpu.matmul %83, %71, %cst_52 {dimension_numbers = #tpu.dot_dimension_numbers<[1], [0], [0], [1], [0, 0, 1, 1], [], []>} : vector<16x16xf32>, vector<16x8xf32>, vector<16x8xf32> -> vector<16x8xf32>
    %c0_53 = arith.constant 0 : index
    %c104 = arith.constant 104 : index
    %c0_54 = arith.constant 0 : index
    %85 = vector.load %arg2[%c0_53, %c104, %c0_54] : memref<2x240x64xf32, #tpu.memory_space<vmem>>, vector<1x8x32xf32>
    %86 = vector.shape_cast %85 : vector<1x8x32xf32> to vector<8x32xf32>
    %cst_55 = arith.constant dense<0.000000e+00> : vector<16x32xf32>
    %87 = tpu.matmul %84, %86, %cst_55 {dimension_numbers = #tpu.dot_dimension_numbers<[1], [0], [0], [1], [0, 0, 1, 1], [], []>} : vector<16x8xf32>, vector<8x32xf32>, vector<16x32xf32> -> vector<16x32xf32>
    %88 = arith.addf %68, %87 : vector<16x32xf32>
    %89 = vector.extract_strided_slice %41 {offsets = [0, 16], sizes = [16, 8], strides = [1, 1]} : vector<16x32xf32> to vector<16x8xf32>
    %90 = vector.extract_strided_slice %44 {offsets = [0, 16], sizes = [16, 8], strides = [1, 1]} : vector<16x32xf32> to vector<16x8xf32>
    %91 = vector.extract_strided_slice %47 {offsets = [0, 16], sizes = [16, 8], strides = [1, 1]} : vector<16x32xf32> to vector<16x8xf32>
    %cst_56 = arith.constant dense<0.000000e+00> : vector<16x16xf32>
    %92 = tpu.matmul %89, %90, %cst_56 {dimension_numbers = #tpu.dot_dimension_numbers<[1], [1], [0], [0], [0, 0, 1, 0], [], []>} : vector<16x8xf32>, vector<16x8xf32>, vector<16x16xf32> -> vector<16x16xf32>
    %93 = arith.addf %92, %4 : vector<16x16xf32>
    %cst_57 = arith.constant dense<0xFF800000> : vector<16xf32>
    %94 = vector.multi_reduction <maximumf>, %93, %cst_57 [1] : vector<16x16xf32> to vector<16xf32>
    %95 = vector.shape_cast %94 : vector<16xf32> to vector<16x1xf32>
    %96 = vector.broadcast %95 : vector<16x1xf32> to vector<16x16xf32>
    %97 = arith.subf %93, %96 : vector<16x16xf32>
    %98 = math.exp %97 : vector<16x16xf32>
    %cst_58 = arith.constant dense<0.000000e+00> : vector<16xf32>
    %99 = vector.multi_reduction <add>, %98, %cst_58 [1] : vector<16x16xf32> to vector<16xf32>
    %100 = vector.shape_cast %99 : vector<16xf32> to vector<16x1xf32>
    %101 = tpu.reciprocal %100 {approx = true} : vector<16x1xf32> -> vector<16x1xf32>
    %102 = vector.broadcast %101 : vector<16x1xf32> to vector<16x16xf32>
    %103 = arith.mulf %98, %102 : vector<16x16xf32>
    %cst_59 = arith.constant dense<0.000000e+00> : vector<16x8xf32>
    %104 = tpu.matmul %103, %91, %cst_59 {dimension_numbers = #tpu.dot_dimension_numbers<[1], [0], [0], [1], [0, 0, 1, 1], [], []>} : vector<16x16xf32>, vector<16x8xf32>, vector<16x8xf32> -> vector<16x8xf32>
    %c0_60 = arith.constant 0 : index
    %c112 = arith.constant 112 : index
    %c0_61 = arith.constant 0 : index
    %105 = vector.load %arg2[%c0_60, %c112, %c0_61] : memref<2x240x64xf32, #tpu.memory_space<vmem>>, vector<1x8x32xf32>
    %106 = vector.shape_cast %105 : vector<1x8x32xf32> to vector<8x32xf32>
    %cst_62 = arith.constant dense<0.000000e+00> : vector<16x32xf32>
    %107 = tpu.matmul %104, %106, %cst_62 {dimension_numbers = #tpu.dot_dimension_numbers<[1], [0], [0], [1], [0, 0, 1, 1], [], []>} : vector<16x8xf32>, vector<8x32xf32>, vector<16x32xf32> -> vector<16x32xf32>
    %108 = arith.addf %88, %107 : vector<16x32xf32>
    %109 = vector.extract_strided_slice %41 {offsets = [0, 24], sizes = [16, 8], strides = [1, 1]} : vector<16x32xf32> to vector<16x8xf32>
    %110 = vector.extract_strided_slice %44 {offsets = [0, 24], sizes = [16, 8], strides = [1, 1]} : vector<16x32xf32> to vector<16x8xf32>
    %111 = vector.extract_strided_slice %47 {offsets = [0, 24], sizes = [16, 8], strides = [1, 1]} : vector<16x32xf32> to vector<16x8xf32>
    %cst_63 = arith.constant dense<0.000000e+00> : vector<16x16xf32>
    %112 = tpu.matmul %109, %110, %cst_63 {dimension_numbers = #tpu.dot_dimension_numbers<[1], [1], [0], [0], [0, 0, 1, 0], [], []>} : vector<16x8xf32>, vector<16x8xf32>, vector<16x16xf32> -> vector<16x16xf32>
    %113 = arith.addf %112, %4 : vector<16x16xf32>
    %cst_64 = arith.constant dense<0xFF800000> : vector<16xf32>
    %114 = vector.multi_reduction <maximumf>, %113, %cst_64 [1] : vector<16x16xf32> to vector<16xf32>
    %115 = vector.shape_cast %114 : vector<16xf32> to vector<16x1xf32>
    %116 = vector.broadcast %115 : vector<16x1xf32> to vector<16x16xf32>
    %117 = arith.subf %113, %116 : vector<16x16xf32>
    %118 = math.exp %117 : vector<16x16xf32>
    %cst_65 = arith.constant dense<0.000000e+00> : vector<16xf32>
    %119 = vector.multi_reduction <add>, %118, %cst_65 [1] : vector<16x16xf32> to vector<16xf32>
    %120 = vector.shape_cast %119 : vector<16xf32> to vector<16x1xf32>
    %121 = tpu.reciprocal %120 {approx = true} : vector<16x1xf32> -> vector<16x1xf32>
    %122 = vector.broadcast %121 : vector<16x1xf32> to vector<16x16xf32>
    %123 = arith.mulf %118, %122 : vector<16x16xf32>
    %cst_66 = arith.constant dense<0.000000e+00> : vector<16x8xf32>
    %124 = tpu.matmul %123, %111, %cst_66 {dimension_numbers = #tpu.dot_dimension_numbers<[1], [0], [0], [1], [0, 0, 1, 1], [], []>} : vector<16x16xf32>, vector<16x8xf32>, vector<16x8xf32> -> vector<16x8xf32>
    %c0_67 = arith.constant 0 : index
    %c120 = arith.constant 120 : index
    %c0_68 = arith.constant 0 : index
    %125 = vector.load %arg2[%c0_67, %c120, %c0_68] : memref<2x240x64xf32, #tpu.memory_space<vmem>>, vector<1x8x32xf32>
    %126 = vector.shape_cast %125 : vector<1x8x32xf32> to vector<8x32xf32>
    %cst_69 = arith.constant dense<0.000000e+00> : vector<16x32xf32>
    %127 = tpu.matmul %124, %126, %cst_69 {dimension_numbers = #tpu.dot_dimension_numbers<[1], [0], [0], [1], [0, 0, 1, 1], [], []>} : vector<16x8xf32>, vector<8x32xf32>, vector<16x32xf32> -> vector<16x32xf32>
    %128 = arith.addf %108, %127 : vector<16x32xf32>
    %129 = arith.addf %8, %128 : vector<16x32xf32>
    %cst_70 = arith.constant dense<0.000000e+00> : vector<16xf32>
    %130 = vector.multi_reduction <add>, %129, %cst_70 [1] : vector<16x32xf32> to vector<16xf32>
    %131 = vector.shape_cast %130 : vector<16xf32> to vector<16x1xf32>
    %cst_71 = arith.constant 3.200000e+01 : f32
    %132 = vector.broadcast %cst_71 : f32 to vector<16x1xf32>
    %133 = arith.divf %131, %132 : vector<16x1xf32>
    %134 = vector.broadcast %133 : vector<16x1xf32> to vector<16x32xf32>
    %135 = arith.subf %129, %134 : vector<16x32xf32>
    %136 = arith.mulf %135, %135 : vector<16x32xf32>
    %cst_72 = arith.constant dense<0.000000e+00> : vector<16xf32>
    %137 = vector.multi_reduction <add>, %136, %cst_72 [1] : vector<16x32xf32> to vector<16xf32>
    %138 = vector.shape_cast %137 : vector<16xf32> to vector<16x1xf32>
    %cst_73 = arith.constant 3.200000e+01 : f32
    %139 = vector.broadcast %cst_73 : f32 to vector<16x1xf32>
    %140 = arith.divf %138, %139 : vector<16x1xf32>
    %141 = vector.broadcast %133 : vector<16x1xf32> to vector<16x32xf32>
    %142 = arith.subf %129, %141 : vector<16x32xf32>
    %cst_74 = arith.constant 9.99999974E-6 : f32
    %143 = vector.broadcast %cst_74 : f32 to vector<16x1xf32>
    %144 = arith.addf %140, %143 : vector<16x1xf32>
    %145 = math.rsqrt %144 : vector<16x1xf32>
    %146 = vector.broadcast %145 : vector<16x1xf32> to vector<16x32xf32>
    %147 = arith.mulf %142, %146 : vector<16x32xf32>
    %148 = vector.broadcast %32 : vector<1x32xf32> to vector<16x32xf32>
    %149 = arith.mulf %147, %148 : vector<16x32xf32>
    %150 = vector.broadcast %34 : vector<1x32xf32> to vector<16x32xf32>
    %151 = arith.addf %149, %150 : vector<16x32xf32>
    %cst_75 = arith.constant dense<0.000000e+00> : vector<16x64xf32>
    %152 = tpu.matmul %151, %16, %cst_75 {dimension_numbers = #tpu.dot_dimension_numbers<[1], [0], [0], [1], [0, 0, 1, 1], [], []>} : vector<16x32xf32>, vector<32x64xf32>, vector<16x64xf32> -> vector<16x64xf32>
    %153 = vector.broadcast %28 : vector<1x64xf32> to vector<16x64xf32>
    %154 = arith.addf %152, %153 : vector<16x64xf32>
    %cst_76 = arith.constant 5.000000e-01 : f32
    %155 = vector.broadcast %cst_76 : f32 to vector<16x64xf32>
    %156 = arith.mulf %155, %154 : vector<16x64xf32>
    %cst_77 = arith.constant 0.707106769 : f32
    %157 = vector.broadcast %cst_77 : f32 to vector<16x64xf32>
    %158 = arith.mulf %154, %157 : vector<16x64xf32>
    %159 = math.absf %158 : vector<16x64xf32>
    %cst_78 = arith.constant 0.327591091 : f32
    %160 = vector.broadcast %cst_78 : f32 to vector<16x64xf32>
    %161 = arith.mulf %160, %159 : vector<16x64xf32>
    %cst_79 = arith.constant 1.000000e+00 : f32
    %162 = vector.broadcast %cst_79 : f32 to vector<16x64xf32>
    %163 = arith.addf %162, %161 : vector<16x64xf32>
    %cst_80 = arith.constant 1.000000e+00 : f32
    %164 = vector.broadcast %cst_80 : f32 to vector<16x64xf32>
    %165 = arith.divf %164, %163 : vector<16x64xf32>
    %cst_81 = arith.constant 1.06140542 : f32
    %166 = vector.broadcast %cst_81 : f32 to vector<16x64xf32>
    %167 = arith.mulf %166, %165 : vector<16x64xf32>
    %cst_82 = arith.constant -1.45315206 : f32
    %168 = vector.broadcast %cst_82 : f32 to vector<16x64xf32>
    %169 = arith.addf %167, %168 : vector<16x64xf32>
    %170 = arith.mulf %169, %165 : vector<16x64xf32>
    %cst_83 = arith.constant 1.42141378 : f32
    %171 = vector.broadcast %cst_83 : f32 to vector<16x64xf32>
    %172 = arith.addf %170, %171 : vector<16x64xf32>
    %173 = arith.mulf %172, %165 : vector<16x64xf32>
    %cst_84 = arith.constant -0.284496725 : f32
    %174 = vector.broadcast %cst_84 : f32 to vector<16x64xf32>
    %175 = arith.addf %173, %174 : vector<16x64xf32>
    %176 = arith.mulf %175, %165 : vector<16x64xf32>
    %cst_85 = arith.constant 0.254829586 : f32
    %177 = vector.broadcast %cst_85 : f32 to vector<16x64xf32>
    %178 = arith.addf %176, %177 : vector<16x64xf32>
    %179 = arith.mulf %178, %165 : vector<16x64xf32>
    %cst_86 = arith.constant 0.000000e+00 : f32
    %180 = vector.broadcast %cst_86 : f32 to vector<16x64xf32>
    %181 = arith.subf %180, %159 : vector<16x64xf32>
    %182 = arith.mulf %181, %159 : vector<16x64xf32>
    %183 = math.exp %182 : vector<16x64xf32>
    %184 = arith.mulf %179, %183 : vector<16x64xf32>
    %cst_87 = arith.constant 1.000000e+00 : f32
    %185 = vector.broadcast %cst_87 : f32 to vector<16x64xf32>
    %186 = arith.subf %185, %184 : vector<16x64xf32>
    %cst_88 = arith.constant 0.000000e+00 : f32
    %187 = vector.broadcast %cst_88 : f32 to vector<16x64xf32>
    %188 = arith.cmpf oge, %158, %187 : vector<16x64xf32>
    %cst_89 = arith.constant 0.000000e+00 : f32
    %189 = vector.broadcast %cst_89 : f32 to vector<16x64xf32>
    %190 = arith.subf %189, %186 : vector<16x64xf32>
    %191 = arith.select %188, %186, %190 : vector<16x64xi1>, vector<16x64xf32>
    %cst_90 = arith.constant 1.000000e+00 : f32
    %192 = vector.broadcast %cst_90 : f32 to vector<16x64xf32>
    %193 = arith.addf %192, %191 : vector<16x64xf32>
    %194 = arith.mulf %156, %193 : vector<16x64xf32>
    %cst_91 = arith.constant dense<0.000000e+00> : vector<16x32xf32>
    %195 = tpu.matmul %194, %18, %cst_91 {dimension_numbers = #tpu.dot_dimension_numbers<[1], [0], [0], [1], [0, 0, 1, 1], [], []>} : vector<16x64xf32>, vector<64x32xf32>, vector<16x32xf32> -> vector<16x32xf32>
    %196 = vector.broadcast %30 : vector<1x32xf32> to vector<16x32xf32>
    %197 = arith.addf %195, %196 : vector<16x32xf32>
    %198 = arith.addf %151, %197 : vector<16x32xf32>
    %cst_92 = arith.constant dense<0.000000e+00> : vector<16xf32>
    %199 = vector.multi_reduction <add>, %198, %cst_92 [1] : vector<16x32xf32> to vector<16xf32>
    %200 = vector.shape_cast %199 : vector<16xf32> to vector<16x1xf32>
    %cst_93 = arith.constant 3.200000e+01 : f32
    %201 = vector.broadcast %cst_93 : f32 to vector<16x1xf32>
    %202 = arith.divf %200, %201 : vector<16x1xf32>
    %203 = vector.broadcast %202 : vector<16x1xf32> to vector<16x32xf32>
    %204 = arith.subf %198, %203 : vector<16x32xf32>
    %205 = arith.mulf %204, %204 : vector<16x32xf32>
    %cst_94 = arith.constant dense<0.000000e+00> : vector<16xf32>
    %206 = vector.multi_reduction <add>, %205, %cst_94 [1] : vector<16x32xf32> to vector<16xf32>
    %207 = vector.shape_cast %206 : vector<16xf32> to vector<16x1xf32>
    %cst_95 = arith.constant 3.200000e+01 : f32
    %208 = vector.broadcast %cst_95 : f32 to vector<16x1xf32>
    %209 = arith.divf %207, %208 : vector<16x1xf32>
    %210 = vector.broadcast %202 : vector<16x1xf32> to vector<16x32xf32>
    %211 = arith.subf %198, %210 : vector<16x32xf32>
    %cst_96 = arith.constant 9.99999974E-6 : f32
    %212 = vector.broadcast %cst_96 : f32 to vector<16x1xf32>
    %213 = arith.addf %209, %212 : vector<16x1xf32>
    %214 = math.rsqrt %213 : vector<16x1xf32>
    %215 = vector.broadcast %214 : vector<16x1xf32> to vector<16x32xf32>
    %216 = arith.mulf %211, %215 : vector<16x32xf32>
    %217 = vector.broadcast %36 : vector<1x32xf32> to vector<16x32xf32>
    %218 = arith.mulf %216, %217 : vector<16x32xf32>
    %219 = vector.broadcast %38 : vector<1x32xf32> to vector<16x32xf32>
    %220 = arith.addf %218, %219 : vector<16x32xf32>
    %c1 = arith.constant 1 : index
    %c0_97 = arith.constant 0 : index
    %c0_98 = arith.constant 0 : index
    %221 = vector.load %arg2[%c1, %c0_97, %c0_98] : memref<2x240x64xf32, #tpu.memory_space<vmem>>, vector<1x32x32xf32>
    %222 = vector.shape_cast %221 : vector<1x32x32xf32> to vector<32x32xf32>
    %c1_99 = arith.constant 1 : index
    %c32_100 = arith.constant 32 : index
    %c0_101 = arith.constant 0 : index
    %223 = vector.load %arg2[%c1_99, %c32_100, %c0_101] : memref<2x240x64xf32, #tpu.memory_space<vmem>>, vector<1x32x32xf32>
    %224 = vector.shape_cast %223 : vector<1x32x32xf32> to vector<32x32xf32>
    %c1_102 = arith.constant 1 : index
    %c64_103 = arith.constant 64 : index
    %c0_104 = arith.constant 0 : index
    %225 = vector.load %arg2[%c1_102, %c64_103, %c0_104] : memref<2x240x64xf32, #tpu.memory_space<vmem>>, vector<1x32x32xf32>
    %226 = vector.shape_cast %225 : vector<1x32x32xf32> to vector<32x32xf32>
    %c1_105 = arith.constant 1 : index
    %c128_106 = arith.constant 128 : index
    %c0_107 = arith.constant 0 : index
    %227 = vector.load %arg2[%c1_105, %c128_106, %c0_107] : memref<2x240x64xf32, #tpu.memory_space<vmem>>, vector<1x32x64xf32>
    %228 = vector.shape_cast %227 : vector<1x32x64xf32> to vector<32x64xf32>
    %c1_108 = arith.constant 1 : index
    %c160_109 = arith.constant 160 : index
    %c0_110 = arith.constant 0 : index
    %229 = vector.load %arg2[%c1_108, %c160_109, %c0_110] : memref<2x240x64xf32, #tpu.memory_space<vmem>>, vector<1x64x32xf32>
    %230 = vector.shape_cast %229 : vector<1x64x32xf32> to vector<64x32xf32>
    %c1_111 = arith.constant 1 : index
    %c224_112 = arith.constant 224 : index
    %c0_113 = arith.constant 0 : index
    %231 = vector.load %arg2[%c1_111, %c224_112, %c0_113] : memref<2x240x64xf32, #tpu.memory_space<vmem>>, vector<1x1x32xf32>
    %232 = vector.shape_cast %231 : vector<1x1x32xf32> to vector<1x32xf32>
    %c1_114 = arith.constant 1 : index
    %c225_115 = arith.constant 225 : index
    %c0_116 = arith.constant 0 : index
    %233 = vector.load %arg2[%c1_114, %c225_115, %c0_116] : memref<2x240x64xf32, #tpu.memory_space<vmem>>, vector<1x1x32xf32>
    %234 = vector.shape_cast %233 : vector<1x1x32xf32> to vector<1x32xf32>
    %c1_117 = arith.constant 1 : index
    %c226_118 = arith.constant 226 : index
    %c0_119 = arith.constant 0 : index
    %235 = vector.load %arg2[%c1_117, %c226_118, %c0_119] : memref<2x240x64xf32, #tpu.memory_space<vmem>>, vector<1x1x32xf32>
    %236 = vector.shape_cast %235 : vector<1x1x32xf32> to vector<1x32xf32>
    %c1_120 = arith.constant 1 : index
    %c227_121 = arith.constant 227 : index
    %c0_122 = arith.constant 0 : index
    %237 = vector.load %arg2[%c1_120, %c227_121, %c0_122] : memref<2x240x64xf32, #tpu.memory_space<vmem>>, vector<1x1x32xf32>
    %238 = vector.shape_cast %237 : vector<1x1x32xf32> to vector<1x32xf32>
    %c1_123 = arith.constant 1 : index
    %c228_124 = arith.constant 228 : index
    %c0_125 = arith.constant 0 : index
    %239 = vector.load %arg2[%c1_123, %c228_124, %c0_125] : memref<2x240x64xf32, #tpu.memory_space<vmem>>, vector<1x1x64xf32>
    %240 = vector.shape_cast %239 : vector<1x1x64xf32> to vector<1x64xf32>
    %c1_126 = arith.constant 1 : index
    %c229_127 = arith.constant 229 : index
    %c0_128 = arith.constant 0 : index
    %241 = vector.load %arg2[%c1_126, %c229_127, %c0_128] : memref<2x240x64xf32, #tpu.memory_space<vmem>>, vector<1x1x32xf32>
    %242 = vector.shape_cast %241 : vector<1x1x32xf32> to vector<1x32xf32>
    %c1_129 = arith.constant 1 : index
    %c230_130 = arith.constant 230 : index
    %c0_131 = arith.constant 0 : index
    %243 = vector.load %arg2[%c1_129, %c230_130, %c0_131] : memref<2x240x64xf32, #tpu.memory_space<vmem>>, vector<1x1x32xf32>
    %244 = vector.shape_cast %243 : vector<1x1x32xf32> to vector<1x32xf32>
    %c1_132 = arith.constant 1 : index
    %c231_133 = arith.constant 231 : index
    %c0_134 = arith.constant 0 : index
    %245 = vector.load %arg2[%c1_132, %c231_133, %c0_134] : memref<2x240x64xf32, #tpu.memory_space<vmem>>, vector<1x1x32xf32>
    %246 = vector.shape_cast %245 : vector<1x1x32xf32> to vector<1x32xf32>
    %c1_135 = arith.constant 1 : index
    %c232_136 = arith.constant 232 : index
    %c0_137 = arith.constant 0 : index
    %247 = vector.load %arg2[%c1_135, %c232_136, %c0_137] : memref<2x240x64xf32, #tpu.memory_space<vmem>>, vector<1x1x32xf32>
    %248 = vector.shape_cast %247 : vector<1x1x32xf32> to vector<1x32xf32>
    %c1_138 = arith.constant 1 : index
    %c233_139 = arith.constant 233 : index
    %c0_140 = arith.constant 0 : index
    %249 = vector.load %arg2[%c1_138, %c233_139, %c0_140] : memref<2x240x64xf32, #tpu.memory_space<vmem>>, vector<1x1x32xf32>
    %250 = vector.shape_cast %249 : vector<1x1x32xf32> to vector<1x32xf32>
    %cst_141 = arith.constant dense<0.000000e+00> : vector<16x32xf32>
    %251 = tpu.matmul %220, %222, %cst_141 {dimension_numbers = #tpu.dot_dimension_numbers<[1], [0], [0], [1], [0, 0, 1, 1], [], []>} : vector<16x32xf32>, vector<32x32xf32>, vector<16x32xf32> -> vector<16x32xf32>
    %252 = vector.broadcast %232 : vector<1x32xf32> to vector<16x32xf32>
    %253 = arith.addf %251, %252 : vector<16x32xf32>
    %cst_142 = arith.constant dense<0.000000e+00> : vector<16x32xf32>
    %254 = tpu.matmul %220, %224, %cst_142 {dimension_numbers = #tpu.dot_dimension_numbers<[1], [0], [0], [1], [0, 0, 1, 1], [], []>} : vector<16x32xf32>, vector<32x32xf32>, vector<16x32xf32> -> vector<16x32xf32>
    %255 = vector.broadcast %234 : vector<1x32xf32> to vector<16x32xf32>
    %256 = arith.addf %254, %255 : vector<16x32xf32>
    %cst_143 = arith.constant dense<0.000000e+00> : vector<16x32xf32>
    %257 = tpu.matmul %220, %226, %cst_143 {dimension_numbers = #tpu.dot_dimension_numbers<[1], [0], [0], [1], [0, 0, 1, 1], [], []>} : vector<16x32xf32>, vector<32x32xf32>, vector<16x32xf32> -> vector<16x32xf32>
    %258 = vector.broadcast %236 : vector<1x32xf32> to vector<16x32xf32>
    %259 = arith.addf %257, %258 : vector<16x32xf32>
    %260 = vector.extract_strided_slice %253 {offsets = [0, 0], sizes = [16, 8], strides = [1, 1]} : vector<16x32xf32> to vector<16x8xf32>
    %261 = vector.extract_strided_slice %256 {offsets = [0, 0], sizes = [16, 8], strides = [1, 1]} : vector<16x32xf32> to vector<16x8xf32>
    %262 = vector.extract_strided_slice %259 {offsets = [0, 0], sizes = [16, 8], strides = [1, 1]} : vector<16x32xf32> to vector<16x8xf32>
    %cst_144 = arith.constant dense<0.000000e+00> : vector<16x16xf32>
    %263 = tpu.matmul %260, %261, %cst_144 {dimension_numbers = #tpu.dot_dimension_numbers<[1], [1], [0], [0], [0, 0, 1, 0], [], []>} : vector<16x8xf32>, vector<16x8xf32>, vector<16x16xf32> -> vector<16x16xf32>
    %264 = arith.addf %263, %4 : vector<16x16xf32>
    %cst_145 = arith.constant dense<0xFF800000> : vector<16xf32>
    %265 = vector.multi_reduction <maximumf>, %264, %cst_145 [1] : vector<16x16xf32> to vector<16xf32>
    %266 = vector.shape_cast %265 : vector<16xf32> to vector<16x1xf32>
    %267 = vector.broadcast %266 : vector<16x1xf32> to vector<16x16xf32>
    %268 = arith.subf %264, %267 : vector<16x16xf32>
    %269 = math.exp %268 : vector<16x16xf32>
    %cst_146 = arith.constant dense<0.000000e+00> : vector<16xf32>
    %270 = vector.multi_reduction <add>, %269, %cst_146 [1] : vector<16x16xf32> to vector<16xf32>
    %271 = vector.shape_cast %270 : vector<16xf32> to vector<16x1xf32>
    %272 = tpu.reciprocal %271 {approx = true} : vector<16x1xf32> -> vector<16x1xf32>
    %273 = vector.broadcast %272 : vector<16x1xf32> to vector<16x16xf32>
    %274 = arith.mulf %269, %273 : vector<16x16xf32>
    %cst_147 = arith.constant dense<0.000000e+00> : vector<16x8xf32>
    %275 = tpu.matmul %274, %262, %cst_147 {dimension_numbers = #tpu.dot_dimension_numbers<[1], [0], [0], [1], [0, 0, 1, 1], [], []>} : vector<16x16xf32>, vector<16x8xf32>, vector<16x8xf32> -> vector<16x8xf32>
    %c1_148 = arith.constant 1 : index
    %c96_149 = arith.constant 96 : index
    %c0_150 = arith.constant 0 : index
    %276 = vector.load %arg2[%c1_148, %c96_149, %c0_150] : memref<2x240x64xf32, #tpu.memory_space<vmem>>, vector<1x8x32xf32>
    %277 = vector.shape_cast %276 : vector<1x8x32xf32> to vector<8x32xf32>
    %cst_151 = arith.constant dense<0.000000e+00> : vector<16x32xf32>
    %278 = tpu.matmul %275, %277, %cst_151 {dimension_numbers = #tpu.dot_dimension_numbers<[1], [0], [0], [1], [0, 0, 1, 1], [], []>} : vector<16x8xf32>, vector<8x32xf32>, vector<16x32xf32> -> vector<16x32xf32>
    %279 = vector.broadcast %238 : vector<1x32xf32> to vector<16x32xf32>
    %280 = arith.addf %279, %278 : vector<16x32xf32>
    %281 = vector.extract_strided_slice %253 {offsets = [0, 8], sizes = [16, 8], strides = [1, 1]} : vector<16x32xf32> to vector<16x8xf32>
    %282 = vector.extract_strided_slice %256 {offsets = [0, 8], sizes = [16, 8], strides = [1, 1]} : vector<16x32xf32> to vector<16x8xf32>
    %283 = vector.extract_strided_slice %259 {offsets = [0, 8], sizes = [16, 8], strides = [1, 1]} : vector<16x32xf32> to vector<16x8xf32>
    %cst_152 = arith.constant dense<0.000000e+00> : vector<16x16xf32>
    %284 = tpu.matmul %281, %282, %cst_152 {dimension_numbers = #tpu.dot_dimension_numbers<[1], [1], [0], [0], [0, 0, 1, 0], [], []>} : vector<16x8xf32>, vector<16x8xf32>, vector<16x16xf32> -> vector<16x16xf32>
    %285 = arith.addf %284, %4 : vector<16x16xf32>
    %cst_153 = arith.constant dense<0xFF800000> : vector<16xf32>
    %286 = vector.multi_reduction <maximumf>, %285, %cst_153 [1] : vector<16x16xf32> to vector<16xf32>
    %287 = vector.shape_cast %286 : vector<16xf32> to vector<16x1xf32>
    %288 = vector.broadcast %287 : vector<16x1xf32> to vector<16x16xf32>
    %289 = arith.subf %285, %288 : vector<16x16xf32>
    %290 = math.exp %289 : vector<16x16xf32>
    %cst_154 = arith.constant dense<0.000000e+00> : vector<16xf32>
    %291 = vector.multi_reduction <add>, %290, %cst_154 [1] : vector<16x16xf32> to vector<16xf32>
    %292 = vector.shape_cast %291 : vector<16xf32> to vector<16x1xf32>
    %293 = tpu.reciprocal %292 {approx = true} : vector<16x1xf32> -> vector<16x1xf32>
    %294 = vector.broadcast %293 : vector<16x1xf32> to vector<16x16xf32>
    %295 = arith.mulf %290, %294 : vector<16x16xf32>
    %cst_155 = arith.constant dense<0.000000e+00> : vector<16x8xf32>
    %296 = tpu.matmul %295, %283, %cst_155 {dimension_numbers = #tpu.dot_dimension_numbers<[1], [0], [0], [1], [0, 0, 1, 1], [], []>} : vector<16x16xf32>, vector<16x8xf32>, vector<16x8xf32> -> vector<16x8xf32>
    %c1_156 = arith.constant 1 : index
    %c104_157 = arith.constant 104 : index
    %c0_158 = arith.constant 0 : index
    %297 = vector.load %arg2[%c1_156, %c104_157, %c0_158] : memref<2x240x64xf32, #tpu.memory_space<vmem>>, vector<1x8x32xf32>
    %298 = vector.shape_cast %297 : vector<1x8x32xf32> to vector<8x32xf32>
    %cst_159 = arith.constant dense<0.000000e+00> : vector<16x32xf32>
    %299 = tpu.matmul %296, %298, %cst_159 {dimension_numbers = #tpu.dot_dimension_numbers<[1], [0], [0], [1], [0, 0, 1, 1], [], []>} : vector<16x8xf32>, vector<8x32xf32>, vector<16x32xf32> -> vector<16x32xf32>
    %300 = arith.addf %280, %299 : vector<16x32xf32>
    %301 = vector.extract_strided_slice %253 {offsets = [0, 16], sizes = [16, 8], strides = [1, 1]} : vector<16x32xf32> to vector<16x8xf32>
    %302 = vector.extract_strided_slice %256 {offsets = [0, 16], sizes = [16, 8], strides = [1, 1]} : vector<16x32xf32> to vector<16x8xf32>
    %303 = vector.extract_strided_slice %259 {offsets = [0, 16], sizes = [16, 8], strides = [1, 1]} : vector<16x32xf32> to vector<16x8xf32>
    %cst_160 = arith.constant dense<0.000000e+00> : vector<16x16xf32>
    %304 = tpu.matmul %301, %302, %cst_160 {dimension_numbers = #tpu.dot_dimension_numbers<[1], [1], [0], [0], [0, 0, 1, 0], [], []>} : vector<16x8xf32>, vector<16x8xf32>, vector<16x16xf32> -> vector<16x16xf32>
    %305 = arith.addf %304, %4 : vector<16x16xf32>
    %cst_161 = arith.constant dense<0xFF800000> : vector<16xf32>
    %306 = vector.multi_reduction <maximumf>, %305, %cst_161 [1] : vector<16x16xf32> to vector<16xf32>
    %307 = vector.shape_cast %306 : vector<16xf32> to vector<16x1xf32>
    %308 = vector.broadcast %307 : vector<16x1xf32> to vector<16x16xf32>
    %309 = arith.subf %305, %308 : vector<16x16xf32>
    %310 = math.exp %309 : vector<16x16xf32>
    %cst_162 = arith.constant dense<0.000000e+00> : vector<16xf32>
    %311 = vector.multi_reduction <add>, %310, %cst_162 [1] : vector<16x16xf32> to vector<16xf32>
    %312 = vector.shape_cast %311 : vector<16xf32> to vector<16x1xf32>
    %313 = tpu.reciprocal %312 {approx = true} : vector<16x1xf32> -> vector<16x1xf32>
    %314 = vector.broadcast %313 : vector<16x1xf32> to vector<16x16xf32>
    %315 = arith.mulf %310, %314 : vector<16x16xf32>
    %cst_163 = arith.constant dense<0.000000e+00> : vector<16x8xf32>
    %316 = tpu.matmul %315, %303, %cst_163 {dimension_numbers = #tpu.dot_dimension_numbers<[1], [0], [0], [1], [0, 0, 1, 1], [], []>} : vector<16x16xf32>, vector<16x8xf32>, vector<16x8xf32> -> vector<16x8xf32>
    %c1_164 = arith.constant 1 : index
    %c112_165 = arith.constant 112 : index
    %c0_166 = arith.constant 0 : index
    %317 = vector.load %arg2[%c1_164, %c112_165, %c0_166] : memref<2x240x64xf32, #tpu.memory_space<vmem>>, vector<1x8x32xf32>
    %318 = vector.shape_cast %317 : vector<1x8x32xf32> to vector<8x32xf32>
    %cst_167 = arith.constant dense<0.000000e+00> : vector<16x32xf32>
    %319 = tpu.matmul %316, %318, %cst_167 {dimension_numbers = #tpu.dot_dimension_numbers<[1], [0], [0], [1], [0, 0, 1, 1], [], []>} : vector<16x8xf32>, vector<8x32xf32>, vector<16x32xf32> -> vector<16x32xf32>
    %320 = arith.addf %300, %319 : vector<16x32xf32>
    %321 = vector.extract_strided_slice %253 {offsets = [0, 24], sizes = [16, 8], strides = [1, 1]} : vector<16x32xf32> to vector<16x8xf32>
    %322 = vector.extract_strided_slice %256 {offsets = [0, 24], sizes = [16, 8], strides = [1, 1]} : vector<16x32xf32> to vector<16x8xf32>
    %323 = vector.extract_strided_slice %259 {offsets = [0, 24], sizes = [16, 8], strides = [1, 1]} : vector<16x32xf32> to vector<16x8xf32>
    %cst_168 = arith.constant dense<0.000000e+00> : vector<16x16xf32>
    %324 = tpu.matmul %321, %322, %cst_168 {dimension_numbers = #tpu.dot_dimension_numbers<[1], [1], [0], [0], [0, 0, 1, 0], [], []>} : vector<16x8xf32>, vector<16x8xf32>, vector<16x16xf32> -> vector<16x16xf32>
    %325 = arith.addf %324, %4 : vector<16x16xf32>
    %cst_169 = arith.constant dense<0xFF800000> : vector<16xf32>
    %326 = vector.multi_reduction <maximumf>, %325, %cst_169 [1] : vector<16x16xf32> to vector<16xf32>
    %327 = vector.shape_cast %326 : vector<16xf32> to vector<16x1xf32>
    %328 = vector.broadcast %327 : vector<16x1xf32> to vector<16x16xf32>
    %329 = arith.subf %325, %328 : vector<16x16xf32>
    %330 = math.exp %329 : vector<16x16xf32>
    %cst_170 = arith.constant dense<0.000000e+00> : vector<16xf32>
    %331 = vector.multi_reduction <add>, %330, %cst_170 [1] : vector<16x16xf32> to vector<16xf32>
    %332 = vector.shape_cast %331 : vector<16xf32> to vector<16x1xf32>
    %333 = tpu.reciprocal %332 {approx = true} : vector<16x1xf32> -> vector<16x1xf32>
    %334 = vector.broadcast %333 : vector<16x1xf32> to vector<16x16xf32>
    %335 = arith.mulf %330, %334 : vector<16x16xf32>
    %cst_171 = arith.constant dense<0.000000e+00> : vector<16x8xf32>
    %336 = tpu.matmul %335, %323, %cst_171 {dimension_numbers = #tpu.dot_dimension_numbers<[1], [0], [0], [1], [0, 0, 1, 1], [], []>} : vector<16x16xf32>, vector<16x8xf32>, vector<16x8xf32> -> vector<16x8xf32>
    %c1_172 = arith.constant 1 : index
    %c120_173 = arith.constant 120 : index
    %c0_174 = arith.constant 0 : index
    %337 = vector.load %arg2[%c1_172, %c120_173, %c0_174] : memref<2x240x64xf32, #tpu.memory_space<vmem>>, vector<1x8x32xf32>
    %338 = vector.shape_cast %337 : vector<1x8x32xf32> to vector<8x32xf32>
    %cst_175 = arith.constant dense<0.000000e+00> : vector<16x32xf32>
    %339 = tpu.matmul %336, %338, %cst_175 {dimension_numbers = #tpu.dot_dimension_numbers<[1], [0], [0], [1], [0, 0, 1, 1], [], []>} : vector<16x8xf32>, vector<8x32xf32>, vector<16x32xf32> -> vector<16x32xf32>
    %340 = arith.addf %320, %339 : vector<16x32xf32>
    %341 = arith.addf %220, %340 : vector<16x32xf32>
    %cst_176 = arith.constant dense<0.000000e+00> : vector<16xf32>
    %342 = vector.multi_reduction <add>, %341, %cst_176 [1] : vector<16x32xf32> to vector<16xf32>
    %343 = vector.shape_cast %342 : vector<16xf32> to vector<16x1xf32>
    %cst_177 = arith.constant 3.200000e+01 : f32
    %344 = vector.broadcast %cst_177 : f32 to vector<16x1xf32>
    %345 = arith.divf %343, %344 : vector<16x1xf32>
    %346 = vector.broadcast %345 : vector<16x1xf32> to vector<16x32xf32>
    %347 = arith.subf %341, %346 : vector<16x32xf32>
    %348 = arith.mulf %347, %347 : vector<16x32xf32>
    %cst_178 = arith.constant dense<0.000000e+00> : vector<16xf32>
    %349 = vector.multi_reduction <add>, %348, %cst_178 [1] : vector<16x32xf32> to vector<16xf32>
    %350 = vector.shape_cast %349 : vector<16xf32> to vector<16x1xf32>
    %cst_179 = arith.constant 3.200000e+01 : f32
    %351 = vector.broadcast %cst_179 : f32 to vector<16x1xf32>
    %352 = arith.divf %350, %351 : vector<16x1xf32>
    %353 = vector.broadcast %345 : vector<16x1xf32> to vector<16x32xf32>
    %354 = arith.subf %341, %353 : vector<16x32xf32>
    %cst_180 = arith.constant 9.99999974E-6 : f32
    %355 = vector.broadcast %cst_180 : f32 to vector<16x1xf32>
    %356 = arith.addf %352, %355 : vector<16x1xf32>
    %357 = math.rsqrt %356 : vector<16x1xf32>
    %358 = vector.broadcast %357 : vector<16x1xf32> to vector<16x32xf32>
    %359 = arith.mulf %354, %358 : vector<16x32xf32>
    %360 = vector.broadcast %244 : vector<1x32xf32> to vector<16x32xf32>
    %361 = arith.mulf %359, %360 : vector<16x32xf32>
    %362 = vector.broadcast %246 : vector<1x32xf32> to vector<16x32xf32>
    %363 = arith.addf %361, %362 : vector<16x32xf32>
    %cst_181 = arith.constant dense<0.000000e+00> : vector<16x64xf32>
    %364 = tpu.matmul %363, %228, %cst_181 {dimension_numbers = #tpu.dot_dimension_numbers<[1], [0], [0], [1], [0, 0, 1, 1], [], []>} : vector<16x32xf32>, vector<32x64xf32>, vector<16x64xf32> -> vector<16x64xf32>
    %365 = vector.broadcast %240 : vector<1x64xf32> to vector<16x64xf32>
    %366 = arith.addf %364, %365 : vector<16x64xf32>
    %cst_182 = arith.constant 5.000000e-01 : f32
    %367 = vector.broadcast %cst_182 : f32 to vector<16x64xf32>
    %368 = arith.mulf %367, %366 : vector<16x64xf32>
    %cst_183 = arith.constant 0.707106769 : f32
    %369 = vector.broadcast %cst_183 : f32 to vector<16x64xf32>
    %370 = arith.mulf %366, %369 : vector<16x64xf32>
    %371 = math.absf %370 : vector<16x64xf32>
    %cst_184 = arith.constant 0.327591091 : f32
    %372 = vector.broadcast %cst_184 : f32 to vector<16x64xf32>
    %373 = arith.mulf %372, %371 : vector<16x64xf32>
    %cst_185 = arith.constant 1.000000e+00 : f32
    %374 = vector.broadcast %cst_185 : f32 to vector<16x64xf32>
    %375 = arith.addf %374, %373 : vector<16x64xf32>
    %cst_186 = arith.constant 1.000000e+00 : f32
    %376 = vector.broadcast %cst_186 : f32 to vector<16x64xf32>
    %377 = arith.divf %376, %375 : vector<16x64xf32>
    %cst_187 = arith.constant 1.06140542 : f32
    %378 = vector.broadcast %cst_187 : f32 to vector<16x64xf32>
    %379 = arith.mulf %378, %377 : vector<16x64xf32>
    %cst_188 = arith.constant -1.45315206 : f32
    %380 = vector.broadcast %cst_188 : f32 to vector<16x64xf32>
    %381 = arith.addf %379, %380 : vector<16x64xf32>
    %382 = arith.mulf %381, %377 : vector<16x64xf32>
    %cst_189 = arith.constant 1.42141378 : f32
    %383 = vector.broadcast %cst_189 : f32 to vector<16x64xf32>
    %384 = arith.addf %382, %383 : vector<16x64xf32>
    %385 = arith.mulf %384, %377 : vector<16x64xf32>
    %cst_190 = arith.constant -0.284496725 : f32
    %386 = vector.broadcast %cst_190 : f32 to vector<16x64xf32>
    %387 = arith.addf %385, %386 : vector<16x64xf32>
    %388 = arith.mulf %387, %377 : vector<16x64xf32>
    %cst_191 = arith.constant 0.254829586 : f32
    %389 = vector.broadcast %cst_191 : f32 to vector<16x64xf32>
    %390 = arith.addf %388, %389 : vector<16x64xf32>
    %391 = arith.mulf %390, %377 : vector<16x64xf32>
    %cst_192 = arith.constant 0.000000e+00 : f32
    %392 = vector.broadcast %cst_192 : f32 to vector<16x64xf32>
    %393 = arith.subf %392, %371 : vector<16x64xf32>
    %394 = arith.mulf %393, %371 : vector<16x64xf32>
    %395 = math.exp %394 : vector<16x64xf32>
    %396 = arith.mulf %391, %395 : vector<16x64xf32>
    %cst_193 = arith.constant 1.000000e+00 : f32
    %397 = vector.broadcast %cst_193 : f32 to vector<16x64xf32>
    %398 = arith.subf %397, %396 : vector<16x64xf32>
    %cst_194 = arith.constant 0.000000e+00 : f32
    %399 = vector.broadcast %cst_194 : f32 to vector<16x64xf32>
    %400 = arith.cmpf oge, %370, %399 : vector<16x64xf32>
    %cst_195 = arith.constant 0.000000e+00 : f32
    %401 = vector.broadcast %cst_195 : f32 to vector<16x64xf32>
    %402 = arith.subf %401, %398 : vector<16x64xf32>
    %403 = arith.select %400, %398, %402 : vector<16x64xi1>, vector<16x64xf32>
    %cst_196 = arith.constant 1.000000e+00 : f32
    %404 = vector.broadcast %cst_196 : f32 to vector<16x64xf32>
    %405 = arith.addf %404, %403 : vector<16x64xf32>
    %406 = arith.mulf %368, %405 : vector<16x64xf32>
    %cst_197 = arith.constant dense<0.000000e+00> : vector<16x32xf32>
    %407 = tpu.matmul %406, %230, %cst_197 {dimension_numbers = #tpu.dot_dimension_numbers<[1], [0], [0], [1], [0, 0, 1, 1], [], []>} : vector<16x64xf32>, vector<64x32xf32>, vector<16x32xf32> -> vector<16x32xf32>
    %408 = vector.broadcast %242 : vector<1x32xf32> to vector<16x32xf32>
    %409 = arith.addf %407, %408 : vector<16x32xf32>
    %410 = arith.addf %363, %409 : vector<16x32xf32>
    %cst_198 = arith.constant dense<0.000000e+00> : vector<16xf32>
    %411 = vector.multi_reduction <add>, %410, %cst_198 [1] : vector<16x32xf32> to vector<16xf32>
    %412 = vector.shape_cast %411 : vector<16xf32> to vector<16x1xf32>
    %cst_199 = arith.constant 3.200000e+01 : f32
    %413 = vector.broadcast %cst_199 : f32 to vector<16x1xf32>
    %414 = arith.divf %412, %413 : vector<16x1xf32>
    %415 = vector.broadcast %414 : vector<16x1xf32> to vector<16x32xf32>
    %416 = arith.subf %410, %415 : vector<16x32xf32>
    %417 = arith.mulf %416, %416 : vector<16x32xf32>
    %cst_200 = arith.constant dense<0.000000e+00> : vector<16xf32>
    %418 = vector.multi_reduction <add>, %417, %cst_200 [1] : vector<16x32xf32> to vector<16xf32>
    %419 = vector.shape_cast %418 : vector<16xf32> to vector<16x1xf32>
    %cst_201 = arith.constant 3.200000e+01 : f32
    %420 = vector.broadcast %cst_201 : f32 to vector<16x1xf32>
    %421 = arith.divf %419, %420 : vector<16x1xf32>
    %422 = vector.broadcast %414 : vector<16x1xf32> to vector<16x32xf32>
    %423 = arith.subf %410, %422 : vector<16x32xf32>
    %cst_202 = arith.constant 9.99999974E-6 : f32
    %424 = vector.broadcast %cst_202 : f32 to vector<16x1xf32>
    %425 = arith.addf %421, %424 : vector<16x1xf32>
    %426 = math.rsqrt %425 : vector<16x1xf32>
    %427 = vector.broadcast %426 : vector<16x1xf32> to vector<16x32xf32>
    %428 = arith.mulf %423, %427 : vector<16x32xf32>
    %429 = vector.broadcast %248 : vector<1x32xf32> to vector<16x32xf32>
    %430 = arith.mulf %428, %429 : vector<16x32xf32>
    %431 = vector.broadcast %250 : vector<1x32xf32> to vector<16x32xf32>
    %432 = arith.addf %430, %431 : vector<16x32xf32>
    %c40 = arith.constant 40 : index
    %c0_203 = arith.constant 0 : index
    %433 = vector.load %arg1[%c40, %c0_203] : memref<104x32xf32, #tpu.memory_space<vmem>>, vector<2x16xf32>
    %cst_204 = arith.constant dense<0.000000e+00> : vector<2x32xf32>
    %434 = tpu.matmul %433, %432, %cst_204 {dimension_numbers = #tpu.dot_dimension_numbers<[1], [0], [0], [1], [0, 0, 1, 1], [], []>} : vector<2x16xf32>, vector<16x32xf32>, vector<2x32xf32> -> vector<2x32xf32>
    %c48 = arith.constant 48 : index
    %c0_205 = arith.constant 0 : index
    %435 = vector.load %arg1[%c48, %c0_205] : memref<104x32xf32, #tpu.memory_space<vmem>>, vector<32x16xf32>
    %c80 = arith.constant 80 : index
    %c0_206 = arith.constant 0 : index
    %436 = vector.load %arg1[%c80, %c0_206] : memref<104x32xf32, #tpu.memory_space<vmem>>, vector<16x2xf32>
    %c97 = arith.constant 97 : index
    %c0_207 = arith.constant 0 : index
    %437 = vector.load %arg1[%c97, %c0_207] : memref<104x32xf32, #tpu.memory_space<vmem>>, vector<1x16xf32>
    %c98 = arith.constant 98 : index
    %c0_208 = arith.constant 0 : index
    %438 = vector.load %arg1[%c98, %c0_208] : memref<104x32xf32, #tpu.memory_space<vmem>>, vector<1x2xf32>
    %cst_209 = arith.constant dense<0.000000e+00> : vector<2x16xf32>
    %439 = tpu.matmul %434, %435, %cst_209 {dimension_numbers = #tpu.dot_dimension_numbers<[1], [0], [0], [1], [0, 0, 1, 1], [], []>} : vector<2x32xf32>, vector<32x16xf32>, vector<2x16xf32> -> vector<2x16xf32>
    %440 = vector.broadcast %437 : vector<1x16xf32> to vector<2x16xf32>
    %441 = arith.addf %439, %440 : vector<2x16xf32>
    %cst_210 = arith.constant 5.000000e-01 : f32
    %442 = vector.broadcast %cst_210 : f32 to vector<2x16xf32>
    %443 = arith.mulf %442, %441 : vector<2x16xf32>
    %cst_211 = arith.constant 0.707106769 : f32
    %444 = vector.broadcast %cst_211 : f32 to vector<2x16xf32>
    %445 = arith.mulf %441, %444 : vector<2x16xf32>
    %446 = math.absf %445 : vector<2x16xf32>
    %cst_212 = arith.constant 0.327591091 : f32
    %447 = vector.broadcast %cst_212 : f32 to vector<2x16xf32>
    %448 = arith.mulf %447, %446 : vector<2x16xf32>
    %cst_213 = arith.constant 1.000000e+00 : f32
    %449 = vector.broadcast %cst_213 : f32 to vector<2x16xf32>
    %450 = arith.addf %449, %448 : vector<2x16xf32>
    %cst_214 = arith.constant 1.000000e+00 : f32
    %451 = vector.broadcast %cst_214 : f32 to vector<2x16xf32>
    %452 = arith.divf %451, %450 : vector<2x16xf32>
    %cst_215 = arith.constant 1.06140542 : f32
    %453 = vector.broadcast %cst_215 : f32 to vector<2x16xf32>
    %454 = arith.mulf %453, %452 : vector<2x16xf32>
    %cst_216 = arith.constant -1.45315206 : f32
    %455 = vector.broadcast %cst_216 : f32 to vector<2x16xf32>
    %456 = arith.addf %454, %455 : vector<2x16xf32>
    %457 = arith.mulf %456, %452 : vector<2x16xf32>
    %cst_217 = arith.constant 1.42141378 : f32
    %458 = vector.broadcast %cst_217 : f32 to vector<2x16xf32>
    %459 = arith.addf %457, %458 : vector<2x16xf32>
    %460 = arith.mulf %459, %452 : vector<2x16xf32>
    %cst_218 = arith.constant -0.284496725 : f32
    %461 = vector.broadcast %cst_218 : f32 to vector<2x16xf32>
    %462 = arith.addf %460, %461 : vector<2x16xf32>
    %463 = arith.mulf %462, %452 : vector<2x16xf32>
    %cst_219 = arith.constant 0.254829586 : f32
    %464 = vector.broadcast %cst_219 : f32 to vector<2x16xf32>
    %465 = arith.addf %463, %464 : vector<2x16xf32>
    %466 = arith.mulf %465, %452 : vector<2x16xf32>
    %cst_220 = arith.constant 0.000000e+00 : f32
    %467 = vector.broadcast %cst_220 : f32 to vector<2x16xf32>
    %468 = arith.subf %467, %446 : vector<2x16xf32>
    %469 = arith.mulf %468, %446 : vector<2x16xf32>
    %470 = math.exp %469 : vector<2x16xf32>
    %471 = arith.mulf %466, %470 : vector<2x16xf32>
    %cst_221 = arith.constant 1.000000e+00 : f32
    %472 = vector.broadcast %cst_221 : f32 to vector<2x16xf32>
    %473 = arith.subf %472, %471 : vector<2x16xf32>
    %cst_222 = arith.constant 0.000000e+00 : f32
    %474 = vector.broadcast %cst_222 : f32 to vector<2x16xf32>
    %475 = arith.cmpf oge, %445, %474 : vector<2x16xf32>
    %cst_223 = arith.constant 0.000000e+00 : f32
    %476 = vector.broadcast %cst_223 : f32 to vector<2x16xf32>
    %477 = arith.subf %476, %473 : vector<2x16xf32>
    %478 = arith.select %475, %473, %477 : vector<2x16xi1>, vector<2x16xf32>
    %cst_224 = arith.constant 1.000000e+00 : f32
    %479 = vector.broadcast %cst_224 : f32 to vector<2x16xf32>
    %480 = arith.addf %479, %478 : vector<2x16xf32>
    %481 = arith.mulf %443, %480 : vector<2x16xf32>
    %cst_225 = arith.constant dense<0.000000e+00> : vector<2x2xf32>
    %482 = tpu.matmul %481, %436, %cst_225 {dimension_numbers = #tpu.dot_dimension_numbers<[1], [0], [0], [1], [0, 0, 1, 1], [], []>} : vector<2x16xf32>, vector<16x2xf32>, vector<2x2xf32> -> vector<2x2xf32>
    %483 = vector.broadcast %438 : vector<1x2xf32> to vector<2x2xf32>
    %484 = arith.addf %482, %483 : vector<2x2xf32>
    %c0_226 = arith.constant 0 : index
    %c0_227 = arith.constant 0 : index
    %485 = vector.load %arg3[%c0_226, %c0_227] : memref<2x2xf32, #tpu.memory_space<vmem>>, vector<2x2xf32>
    tpu.vector_store %arg3[%c0_226, %c0_227], %484 {strides = array<i32>} : memref<2x2xf32, #tpu.memory_space<vmem>>, vector<2x2xf32>,
    return
  }
}

</mosaic_0001>

<bundles_post_ra>
// kernel: tpu_custom_call.1
= control target key start
LH: loop header
LB: loop body
LE: loop exit
PB: predicated region body
PF: predicated region fallthrough
CT: control target
= control target key end

     0   :  { %vm27_vm0 = vcmask 64512   ;;  %s5219_s0 = inlined_call_operand.vmem [shape: f32[16,8], index: 0, kind: input, shape index: {}]   ;;  %s5220_s1 = inlined_call_operand.vmem [shape: f32[104,32], index: 1, kind: input, shape index: {}]   ;;  %s5221_s2 = inlined_call_operand.vmem [shape: f32[2,240,64], index: 2, kind: input, shape index: {}]   ;;  %s5222_s3 = inlined_call_operand.hbm [shape: f32[2,2], index: 3, kind: output, shape index: {}]  }
   0x1   :  { %v17_v0 = vld [vmem:[%s5220_s1 + $0x20] sm:$0xff]  ;;  %v16_v2 = vld [vmem:[%s5219_s0 + $0x8] sm:$0xff]  ;;  %v114_v3 = vld [vmem:[%s5221_s2 + $0x18] sm:$0xff] }
   0x2   :  { %v15_v1 = vld [vmem:[%s5219_s0] sm:$0xff]  ;;  %4141 = vmatprep.subr.mxu0 %v17_v0 }
   0x3   :  { %4143 = vmatprep.mubr.msk.f32.mxu0 %vm27_vm0, %v15_v1 }
   0x4   :  { %8 = vsyncpa [#allocation3], 0  ;;  %4142 = vmatpush3.msra.mxu0 %v17_v0  ;;  %4146 = vmatprep.subr.mxu1 %v114_v3  ;;  %v118_v4 = vld [vmem:[%s5221_s2 + $0x38] sm:$0xff]  ;;  %v113_v5 = vld [vmem:[%s5221_s2 + $0x10] sm:$0xff]  ;;  %vm149_vm1 = vcmask 261120   ;;  %s4579_s23 = smov 120  }
   0x5   :  { %4144 = vmatmul.mubr.msk.f32.vlgmr.msra.gmra.mxu0 %vm27_vm0, %v16_v2  ;;  %4147 = vmatpush3.msra.mxu1 %v114_v3  ;;  %v117_v6 = vld [vmem:[%s5221_s2 + $0x30] sm:$0xff]  ;;  %v112_v7 = vld [vmem:[%s5221_s2 + $0x8] sm:$0xff]  ;;  %v111_v9 = vld [vmem:[%s5221_s2] sm:$0xff]  ;;  %vm476_vm2 = vcmask 130048   ;;  %s4580_s30 = smov 112   ;;  %s4581_s6 = smov 104  }
   0x6   :  { %4157 = vmatprep.subr.mxu0 %v118_v4  ;;  %4148 = vmatprep.subr.mxu1 %v113_v5  ;;  %v116_v8 = vld [vmem:[%s5221_s2 + $0x28] sm:$0xff]  ;;  %v115_v10 = vld [vmem:[%s5221_s2 + $0x20] sm:$0xff]  ;;  %v122_v11 = vld [vmem:[%s5221_s2 + $0x58] sm:$0xff]  ;;  %vm1706_vm5 = vcmask 523264   ;;  %vm4583_vm8 = vmmov 0   ;;  %s4584_s15 = smov [#allocation2]  }
   0x7   :  { %4158 = vmatpush3.msra.mxu0 %v118_v4  ;;  %4149 = vmatpush3.msra.mxu1 %v113_v5  ;;  %v3821_v12 = vld [vmem:[%s5220_s1 + $0x60] ss:$0 sm:$0xff]  ;;  %v20_v17 = vld [vmem:[%s5220_s1 + $0x8] sm:$0xff]  ;;  %v121_v21 = vld [vmem:[%s5221_s2 + $0x50] sm:$0xff]  ;;  %vm3805_vm10 = vcmask 9216  }
   0x8   :  { %4159 = vmatprep.subr.mxu0 %v117_v6  ;;  %4150 = vmatprep.subr.mxu1 %v112_v7  ;;  %v19_v15 = vld [vmem:[%s5220_s1] sm:$0xff]  ;;  %v120_v22 = vld [vmem:[%s5221_s2 + $0x48] sm:$0xff]  ;;  %v4721_v40 = vld [vmem:[%s5220_s1 + $0x10] sm:$0xff] }
   0x9   :  { %4160 = vmatpush3.msra.mxu0 %v117_v6  ;;  %4151 = vmatpush3.msra.mxu1 %v112_v7  ;;  %v119_v23 = vld [vmem:[%s5221_s2 + $0x40] sm:$0xff]  ;;  %v4726_v41 = vld [vmem:[%s5220_s1 + $0x18] sm:$0xff] }
   0xa   :  { %4161 = vmatprep.subr.mxu0 %v116_v8  ;;  %4152 = vmatprep.subr.mxu1 %v111_v9  ;;  %v3827_v24 = vld [vmem:[%s5221_s2 + $0xe1] ss:$0 sm:$0xff]  ;;  %v3824_v28 = vld [vmem:[%s5221_s2 + $0xe0] ss:$0 sm:$0xff]  ;;  %v3830_v33 = vld [vmem:[%s5221_s2 + $0xe2] ss:$0 sm:$0xff] }
   0xb   :  { %4162 = vmatpush3.msra.mxu0 %v116_v8  ;;  %4153 = vmatpush3.msra.mxu1 %v111_v9  ;;  %v580_v7 = vld [vmem:[%s5221_s2 + $0x60] sm:$0xff] }
   0xc   :  { %4163 = vmatprep.subr.mxu0 %v115_v10  ;;  %4168 = vmatprep.subr.mxu1 %v122_v11 }
   0xd   :  { %4164 = vmatpush3.msra.mxu0 %v115_v10 }
  0xc5   :  { %v4145_v13 = vpop.f32.mrf.mxu0 }
  0xc6   :  { %v106_v14 = vadd.f32 %v4145_v13, %v3821_v12 }
  0xc7   :  { %v100_v16 = vpop.f32.mrf.mxu0 }
  0xc8   :  { %v101_v18 = vadd.f32 %v3821_v12, %v100_v16  ;;  %v4654_v20 = vadd.f32 %v106_v14, %v20_v17 }
  0xca   :  { %v4652_v19 = vadd.f32 %v101_v18, %v19_v15 }
  0xcc   :  { %4154 = vmatprep.mubr.msk.f32.mxu1 %vm149_vm1, %v4652_v19  ;;  %4165 = vmatprep.mubr.msk.f32.mxu0 %vm149_vm1, %v4652_v19 }
  0xcd   :  { %4155 = vmatmul.mubr.msk.f32.vlgmr.msra.gmra.mxu1 %vm149_vm1, %v4654_v20  ;;  %4166 = vmatmul.mubr.msk.f32.vlgmr.msra.gmra.mxu0 %vm149_vm1, %v4654_v20 }
  0xce   :  { %4169 = vmatpush3.msra.mxu1 %v122_v11  ;;  %4176 = vmatprep.mubr.msk.f32.mxu1 %vm149_vm1, %v4652_v19 }
  0xcf   :  { %4170 = vmatprep.subr.mxu1 %v121_v21 }
  0xd0   :  { %4171 = vmatpush3.msra.mxu1 %v121_v21 }
  0xd1   :  { %4172 = vmatprep.subr.mxu1 %v120_v22 }
  0xd2   :  { %4173 = vmatpush3.msra.mxu1 %v120_v22 }
  0xd3   :  { %4174 = vmatprep.subr.mxu1 %v119_v23 }
  0xd4   :  { %4175 = vmatpush3.msra.mxu1 %v119_v23 }
  0xd5   :  { %4177 = vmatmul.mubr.msk.f32.vlgmr.msra.gmra.mxu1 %vm149_vm1, %v4654_v20 }
 0x18d   :  { %v4156_v25 = vpop.f32.mrf.mxu1  ;;  %v4167_v26 = vpop.f32.mrf.mxu0 }
 0x18e   :  { %v4680_v27 = vadd.f32 %v4167_v26, %v3827_v24  ;;  %v4704_v35 = vadd.f32 %v4156_v25, %v3824_v28 }
 0x18f   :  { %v222_v29 = vpop.f32.mrf.mxu1  ;;  %v301_v30 = vpop.f32.mrf.mxu0 }
 0x190   :  { %v4685_v31 = vadd.f32 %v3824_v28, %v222_v29  ;;  %v4687_v32 = vadd.f32 %v3827_v24, %v301_v30  ;;  %4179 = vmatprep.subr.msk.mxu0 %vm27_vm0, %v4680_v27 }
 0x191   :  { %4180 = vmatpush3.xpose.msk.msra.mxu0 %vm27_vm0, %v4680_v27 }
 0x192   :  { %672 = vrot.lane.b32.xlu1 %v4687_v32, %s4579_s23  ;;  %4181 = vmatprep.subr.msk.mxu0 %vm27_vm0, %v4687_v32 }
 0x193   :  { %4183 = vmatprep.mubr.msk.f32.mxu0 %vm27_vm0, %v4685_v31 }
 0x195   :  { %v4178_v34 = vpop.f32.mrf.mxu1  ;;  %4182 = vmatpush3.xpose.msk.msra.mxu0 %vm27_vm0, %v4687_v32 }
 0x196   :  { %v4706_v36 = vadd.f32 %v4178_v34, %v3830_v33  ;;  %668 = vrot.lane.b32.xlu1 %v4685_v31, %s4579_s23  ;;  %4193 = vmatprep.subr.mxu0 %v580_v7 }
 0x197   :  { %v380_v37 = vpop.f32.mrf.mxu1 }
 0x198   :  { %v4710_v38 = vadd.f32 %v3830_v33, %v380_v37  ;;  %4186 = vmatprep.subr.mxu1 %v4706_v36  ;;  %4184 = vmatmul.mubr.msk.f32.vlgmr.msra.gmra.mxu0 %vm27_vm0, %v4704_v35 }
 0x199   :  { %4187 = vmatpush3.msra.mxu1 %v4706_v36  ;;  %4194 = vmatpush3.msra.mxu0 %v580_v7 }
 0x19a   :  { %4188 = vmatprep.subr.mxu1 %v4710_v38 }
 0x19b   :  { %4189 = vmatpush3.msra.mxu1 %v4710_v38 }
 0x204   :  { %v673_v58 = vpop.permute.xlu1 %672 }
 0x208   :  { %v669_v59 = vpop.permute.xlu1 %668 }
 0x258   :  { %v4185_v39 = vpop.f32.mrf.mxu0 }
 0x259   :  { %v473_v44 = vadd.f32 %v4185_v39, %v4726_v41 }
 0x25a   :  { %v467_v42 = vpop.f32.mrf.mxu0 }
 0x25b   :  { %v468_v43 = vadd.f32 %v467_v42, %v4721_v40  ;;  %v480_v46 = vsel %vm476_vm2, %v473_v44, -inf }
 0x25d   :  { %v477_v45 = vsel %vm476_vm2, %v468_v43, -inf }
 0x25e   :  { %478 = vmax.xlane.f32.xlu0 %v477_v45 }
 0x262   :  { %481 = vmax.xlane.f32.xlu0 %v480_v46 }
 0x278   :  { %674 = vrot.lane.b32.xlu0 %v4680_v27, %s4579_s23 }
 0x27c   :  { %960 = vrot.lane.b32.xlu0 %v4680_v27, %s4580_s30 }
 0x280   :  { %954 = vrot.lane.b32.xlu0 %v4685_v31, %s4580_s30 }
 0x2e7   :  { %v479_v47 = vpop.xlane.xlu0 %478 }
 0x2e8   :  { %v483_v48 = vsub.f32 %v468_v43, %v479_v47 }
 0x2ea   :  { %v485_v51 = vmul.f32 1.442695, %v483_v48 }
 0x2eb   :  { %v482_v49 = vpop.xlane.xlu0 %481 }
 0x2ec   :  { %v484_v50 = vsub.f32 %v473_v44, %v482_v49 }
 0x2ee   :  { %v487_v52 = vmul.f32 1.442695, %v484_v50 }
 0x2ef   :  { %v675_v53 = vpop.permute.xlu0 %674 }
 0x2f0   :  { %4455 = vpow2.f32 %v487_v52  ;;  %4198 = vmatprep.subr.msk.mxu1 %vm27_vm0, %v675_v53 }
 0x2f1   :  { %4457 = vpow2.f32 %v485_v51 }
 0x2f3   :  { %v961_v2 = vpop.permute.xlu0 %960 }
 0x2f7   :  { %v955_v4 = vpop.permute.xlu0 %954 }
 0x2fd   :  { %v4456_v54 = vpop.eup %4455 }
 0x2fe   :  { %v492_v55 = vsel %vm476_vm2, %v4456_v54, 0.0  ;;  %v4458_v56 = vpop.eup %4457 }
 0x2ff   :  { %493 = vadd.xlane.f32.xlu1 %v492_v55  ;;  %v489_v57 = vsel %vm476_vm2, %v4458_v56, 0.0 }
 0x303   :  { %490 = vadd.xlane.f32.xlu1 %v489_v57 }
 0x314   :  { %670 = vrot.lane.b32.xlu1 %v4704_v35, %s4579_s23 }
 0x318   :  { %958 = vrot.lane.b32.xlu1 %v4687_v32, %s4580_s30 }
 0x31c   :  { %956 = vrot.lane.b32.xlu1 %v4704_v35, %s4580_s30 }
 0x388   :  { %v494_v60 = vpop.xlane.xlu1 %493 }
 0x389   :  { %4459 = vrcp.f32 %v494_v60  ;;  %v870_v60 = vld [vmem:[%s5221_s2 + $0x68] sm:$0xff] }
 0x38c   :  { %v491_v61 = vpop.xlane.xlu1 %490 }
 0x38d   :  { %4461 = vrcp.f32 %v491_v61 }
 0x390   :  { %v671_v3 = vpop.permute.xlu1 %670 }
 0x394   :  { %v959_v5 = vpop.permute.xlu1 %958 }
 0x396   :  { %v4460_v62 = vpop.eup %4459 }
 0x397   :  { %v498_v1 = vmul.f32 %v4460_v62, %v4456_v54 }
 0x398   :  { %v957_v6 = vpop.permute.xlu1 %956 }
 0x39a   :  { %v4462_v63 = vpop.eup %4461 }
 0x39b   :  { %v497_v0 = vmul.f32 %v4462_v63, %v4458_v56 }
 0x39d   :  { %4190 = vmatprep.mubr.msk.f32.mxu1 %vm476_vm2, %v497_v0 }
 0x39e   :  { %4191 = vmatmul.mubr.msk.f32.vlgmr.msra.gmra.mxu1 %vm476_vm2, %v498_v1 }
 0x39f   :  { %4199 = vmatpush3.xpose.msk.msra.mxu1 %vm27_vm0, %v675_v53  ;;  %4202 = vmatprep.mubr.msk.f32.mxu1 %vm27_vm0, %v669_v59 }
 0x3a0   :  { %4200 = vmatprep.subr.msk.mxu1 %vm27_vm0, %v673_v58 }
 0x3a3   :  { %4201 = vmatpush3.xpose.msk.msra.mxu1 %vm27_vm0, %v673_v58 }
 0x3a4   :  { %4217 = vmatprep.subr.msk.mxu1 %vm27_vm0, %v961_v2 }
 0x3a6   :  { %4203 = vmatmul.mubr.msk.f32.vlgmr.msra.gmra.mxu1 %vm27_vm0, %v671_v3 }
 0x3a7   :  { %4218 = vmatpush3.xpose.msk.msra.mxu1 %vm27_vm0, %v961_v2  ;;  %4221 = vmatprep.mubr.msk.f32.mxu1 %vm27_vm0, %v955_v4 }
 0x3a8   :  { %4219 = vmatprep.subr.msk.mxu1 %vm27_vm0, %v959_v5 }
 0x3ab   :  { %4220 = vmatpush3.xpose.msk.msra.mxu1 %vm27_vm0, %v959_v5 }
 0x3ae   :  { %4222 = vmatmul.mubr.msk.f32.vlgmr.msra.gmra.mxu1 %vm27_vm0, %v957_v6 }
 0x45e   :  { %v4192_v8 = vpop.f32.mrf.mxu1 }
 0x460   :  { %v571_v9 = vpop.f32.mrf.mxu1 }
 0x461   :  { %4195 = vmatprep.mubr.msk.f32.mxu0 %vm27_vm0, %v571_v9 }
 0x462   :  { %4196 = vmatmul.mubr.msk.f32.vlgmr.msra.gmra.mxu0 %vm27_vm0, %v4192_v8 }
 0x466   :  { %v4204_v10 = vpop.f32.mrf.mxu1 }
 0x467   :  { %v756_v11 = vadd.f32 %v4204_v10, %v4726_v41 }
 0x468   :  { %v750_v12 = vpop.f32.mrf.mxu1 }
 0x469   :  { %v751_v13 = vadd.f32 %v750_v12, %v4721_v40  ;;  %v762_v14 = vsel %vm476_vm2, %v756_v11, -inf }
 0x46a   :  { %763 = vmax.xlane.f32.xlu1 %v762_v14 }
 0x46b   :  { %v759_v15 = vsel %vm476_vm2, %v751_v13, -inf }
 0x46c   :  { %760 = vmax.xlane.f32.xlu0 %v759_v15  ;;  %v1154_v15 = vld [vmem:[%s5221_s2 + $0x70] sm:$0xff] }
 0x46e   :  { %v4223_v16 = vpop.f32.mrf.mxu1 }
 0x46f   :  { %v1042_v17 = vadd.f32 %v4223_v16, %v4726_v41 }
 0x470   :  { %v1036_v43 = vpop.f32.mrf.mxu1 }
 0x471   :  { %v1048_v18 = vsel %vm476_vm2, %v1042_v17, -inf  ;;  %v1037_v44 = vadd.f32 %v1036_v43, %v4721_v40 }
 0x473   :  { %v1045_v45 = vsel %vm476_vm2, %v1037_v44, -inf }
 0x47b   :  { %783 = vrot.lane.b32.xlu1 %v4710_v38, %s4579_s23 }
 0x47f   :  { %1244 = vrot.lane.b32.xlu1 %v4680_v27, %s4581_s6 }
 0x483   :  { %1242 = vrot.lane.b32.xlu1 %v4687_v32, %s4581_s6 }
 0x487   :  { %1240 = vrot.lane.b32.xlu1 %v4704_v35, %s4581_s6 }
 0x4ab   :  { %1049 = vmax.xlane.f32.xlu1 %v1048_v18 }
 0x4bc   :  { %1067 = vrot.lane.b32.xlu1 %v4710_v38, %s4580_s30 }
 0x4f3   :  { %v764_v21 = vpop.xlane.xlu1 %763 }
 0x4f4   :  { %v766_v22 = vsub.f32 %v756_v11, %v764_v21 }
 0x4f5   :  { %v761_v23 = vpop.xlane.xlu0 %760 }
 0x4f6   :  { %v769_v24 = vmul.f32 1.442695, %v766_v22  ;;  %v765_v25 = vsub.f32 %v751_v13, %v761_v23 }
 0x4f7   :  { %v784_v26 = vpop.permute.xlu1 %783 }
 0x4f8   :  { %4463 = vpow2.f32 %v769_v24  ;;  %v767_v27 = vmul.f32 1.442695, %v765_v25 }
 0x4fa   :  { %4465 = vpow2.f32 %v767_v27 }
 0x4fb   :  { %v1245_v28 = vpop.permute.xlu1 %1244 }
 0x4fc   :  { %4236 = vmatprep.subr.msk.mxu1 %vm27_vm0, %v1245_v28 }
 0x4fd   :  { %4237 = vmatpush3.xpose.msk.msra.mxu1 %vm27_vm0, %v1245_v28  ;;  %v3841_v28 = vld [vmem:[%s5221_s2 + $0xe3] ss:$0 sm:$0xff] }
 0x4ff   :  { %v1243_v29 = vpop.permute.xlu1 %1242 }
 0x500   :  { %4238 = vmatprep.subr.msk.mxu1 %vm27_vm0, %v1243_v29 }
 0x501   :  { %4239 = vmatpush3.xpose.msk.msra.mxu1 %vm27_vm0, %v1243_v29 }
 0x503   :  { %v1241_v35 = vpop.permute.xlu1 %1240 }
 0x505   :  { %v4464_v30 = vpop.eup %4463 }
 0x506   :  { %v774_v32 = vsel %vm476_vm2, %v4464_v30, 0.0 }
 0x507   :  { %v4466_v33 = vpop.eup %4465  ;;  %775 = vadd.xlane.f32.xlu0 %v774_v32 }
 0x508   :  { %v771_v34 = vsel %vm476_vm2, %v4466_v33, 0.0 }
 0x50b   :  { %772 = vadd.xlane.f32.xlu0 %v771_v34 }
 0x521   :  { %785 = vrot.lane.b32.xlu0 %v4706_v36, %s4579_s23 }
 0x522   :  { %v4197_v63 = vpop.f32.mrf.mxu0 }
 0x523   :  { %v667_v29 = vadd.f32 %v4197_v63, %v3841_v28 }
 0x524   :  { %v4808_v4 = vpop.f32.mrf.mxu0 }
 0x525   :  { %1238 = vrot.lane.b32.xlu0 %v4685_v31, %s4581_s6 }
 0x534   :  { %v1050_v37 = vpop.xlane.xlu1 %1049 }
 0x535   :  { %v1052_v39 = vsub.f32 %v1042_v17, %v1050_v37 }
 0x537   :  { %v1055_v42 = vmul.f32 1.442695, %v1052_v39 }
 0x538   :  { %v1068_v10 = vpop.permute.xlu1 %1067 }
 0x539   :  { %4467 = vpow2.f32 %v1055_v42 }
 0x544   :  { %1046 = vmax.xlane.f32.xlu0 %v1045_v45 }
 0x546   :  { %v4468_v46 = vpop.eup %4467 }
 0x547   :  { %v1060_v47 = vsel %vm476_vm2, %v4468_v46, 0.0 }
 0x548   :  { %1061 = vadd.xlane.f32.xlu0 %v1060_v47 }
 0x590   :  { %v776_v48 = vpop.xlane.xlu0 %775 }
 0x591   :  { %4469 = vrcp.f32 %v776_v48 }
 0x594   :  { %v773_v49 = vpop.xlane.xlu0 %772 }
 0x595   :  { %4471 = vrcp.f32 %v773_v49 }
 0x598   :  { %v786_v31 = vpop.permute.xlu0 %785 }
 0x599   :  { %4205 = vmatprep.subr.mxu0 %v786_v31 }
 0x59a   :  { %4206 = vmatpush3.msra.mxu0 %v786_v31 }
 0x59b   :  { %4207 = vmatprep.subr.mxu0 %v784_v26 }
 0x59c   :  { %4208 = vmatpush3.msra.mxu0 %v784_v26  ;;  %v1239_v50 = vpop.permute.xlu0 %1238 }
 0x59d   :  { %4240 = vmatprep.mubr.msk.f32.mxu1 %vm27_vm0, %v1239_v50  ;;  %4212 = vmatprep.subr.mxu0 %v870_v60 }
 0x59e   :  { %4241 = vmatmul.mubr.msk.f32.vlgmr.msra.gmra.mxu1 %vm27_vm0, %v1241_v35  ;;  %v4470_v51 = vpop.eup %4469 }
 0x59f   :  { %v780_v54 = vmul.f32 %v4470_v51, %v4464_v30  ;;  %v666_v51 = vadd.f32 %v3841_v28, %v4808_v4  ;;  %v134_v28 = vld [vmem:[%s5221_s2 + $0xd8] sm:$0xff] }
 0x5a2   :  { %v4472_v52 = vpop.eup %4471 }
 0x5a3   :  { %v779_v53 = vmul.f32 %v4472_v52, %v4466_v33 }
 0x5a5   :  { %4209 = vmatprep.mubr.msk.f32.mxu0 %vm476_vm2, %v779_v53 }
 0x5a6   :  { %4210 = vmatmul.mubr.msk.f32.vlgmr.msra.gmra.mxu0 %vm476_vm2, %v780_v54 }
 0x5a7   :  { %4213 = vmatpush3.msra.mxu0 %v870_v60 }
 0x5cd   :  { %v1047_v55 = vpop.xlane.xlu0 %1046 }
 0x5ce   :  { %v1051_v56 = vsub.f32 %v1037_v44, %v1047_v55 }
 0x5d0   :  { %v1053_v57 = vmul.f32 1.442695, %v1051_v56 }
 0x5d1   :  { %v1062_v5 = vpop.xlane.xlu0 %1061 }
 0x5d2   :  { %4473 = vpow2.f32 %v1053_v57 }
 0x5d3   :  { %4475 = vrcp.f32 %v1062_v5 }
 0x5df   :  { %v4474_v58 = vpop.eup %4473 }
 0x5e0   :  { %v1057_v59 = vsel %vm476_vm2, %v4474_v58, 0.0  ;;  %v4476_v11 = vpop.eup %4475 }
 0x5e1   :  { %1058 = vadd.xlane.f32.xlu0 %v1057_v59  ;;  %v1066_v14 = vmul.f32 %v4476_v11, %v4468_v46  ;;  %v1438_v46 = vld [vmem:[%s5221_s2 + $0x78] sm:$0xff] }
 0x5f7   :  { %1069 = vrot.lane.b32.xlu0 %v4706_v36, %s4580_s30 }
 0x65e   :  { %v4242_v61 = vpop.f32.mrf.mxu1 }
 0x65f   :  { %v1326_v62 = vadd.f32 %v4242_v61, %v4726_v41 }
 0x660   :  { %v1320_v0 = vpop.f32.mrf.mxu1 }
 0x661   :  { %v1321_v1 = vadd.f32 %v1320_v0, %v4721_v40  ;;  %v1332_v2 = vsel %vm476_vm2, %v1326_v62, -inf }
 0x662   :  { %1333 = vmax.xlane.f32.xlu0 %v1332_v2 }
 0x663   :  { %v1329_v3 = vsel %vm476_vm2, %v1321_v1, -inf }
 0x664   :  { %1330 = vmax.xlane.f32.xlu1 %v1329_v3 }
 0x666   :  { %v4211_v6 = vpop.f32.mrf.mxu0 }
 0x668   :  { %v861_v7 = vpop.f32.mrf.mxu0 }
 0x669   :  { %4214 = vmatprep.mubr.msk.f32.mxu0 %vm27_vm0, %v861_v7  ;;  %v125_v7 = vld [vmem:[%s5221_s2 + $0x90] sm:$0xff] }
 0x66a   :  { %4215 = vmatmul.mubr.msk.f32.vlgmr.msra.gmra.mxu0 %vm27_vm0, %v4211_v6  ;;  %v1059_v8 = vpop.xlane.xlu0 %1058 }
 0x66b   :  { %4477 = vrcp.f32 %v1059_v8  ;;  %v124_v8 = vld [vmem:[%s5221_s2 + $0x88] sm:$0xff] }
 0x66e   :  { %v1070_v9 = vpop.permute.xlu0 %1069 }
 0x66f   :  { %4224 = vmatprep.subr.mxu0 %v1070_v9 }
 0x670   :  { %4225 = vmatpush3.msra.mxu0 %v1070_v9  ;;  %v123_v9 = vld [vmem:[%s5221_s2 + $0x80] sm:$0xff] }
 0x671   :  { %4226 = vmatprep.subr.mxu0 %v1068_v10 }
 0x672   :  { %4227 = vmatpush3.msra.mxu0 %v1068_v10 }
 0x673   :  { %4231 = vmatprep.subr.mxu0 %v1154_v15 }
 0x678   :  { %v4478_v12 = vpop.eup %4477 }
 0x679   :  { %v1065_v13 = vmul.f32 %v4478_v12, %v4474_v58 }
 0x67b   :  { %4228 = vmatprep.mubr.msk.f32.mxu0 %vm476_vm2, %v1065_v13 }
 0x67c   :  { %4229 = vmatmul.mubr.msk.f32.vlgmr.msra.gmra.mxu0 %vm476_vm2, %v1066_v14 }
 0x67d   :  { %4232 = vmatpush3.msra.mxu0 %v1154_v15 }
 0x6eb   :  { %v1334_v16 = vpop.xlane.xlu0 %1333 }
 0x6ec   :  { %v1336_v17 = vsub.f32 %v1326_v62, %v1334_v16 }
 0x6ed   :  { %v1331_v18 = vpop.xlane.xlu1 %1330 }
 0x6ee   :  { %v1339_v21 = vmul.f32 1.442695, %v1336_v17  ;;  %v1335_v22 = vsub.f32 %v1321_v1, %v1331_v18  ;;  %v3866_v17 = vld [vmem:[%s5221_s2 + $0xe6] ss:$0 sm:$0xff] }
 0x6f0   :  { %4479 = vpow2.f32 %v1339_v21  ;;  %v1337_v23 = vmul.f32 1.442695, %v1335_v22 }
 0x6f2   :  { %4481 = vpow2.f32 %v1337_v23 }
 0x6fd   :  { %v4480_v24 = vpop.eup %4479 }
 0x6fe   :  { %v1344_v25 = vsel %vm476_vm2, %v4480_v24, 0.0 }
 0x6ff   :  { %v4482_v26 = vpop.eup %4481  ;;  %1345 = vadd.xlane.f32.xlu1 %v1344_v25 }
 0x700   :  { %v1341_v27 = vsel %vm476_vm2, %v4482_v26, 0.0 }
 0x701   :  { %1342 = vadd.xlane.f32.xlu0 %v1341_v27 }
 0x710   :  { %1351 = vrot.lane.b32.xlu1 %v4710_v38, %s4581_s6 }
 0x717   :  { %1353 = vrot.lane.b32.xlu0 %v4706_v36, %s4581_s6 }
 0x72a   :  { %v4216_v30 = vpop.f32.mrf.mxu0 }
 0x72b   :  { %v953_v32 = vadd.f32 %v4216_v30, %v667_v29  ;;  %v133_v29 = vld [vmem:[%s5221_s2 + $0xd0] sm:$0xff]  ;;  %v132_v30 = vld [vmem:[%s5221_s2 + $0xc8] sm:$0xff] }
 0x72c   :  { %v943_v33 = vpop.f32.mrf.mxu0 }
 0x72d   :  { %v952_v52 = vadd.f32 %v943_v33, %v666_v51  ;;  %v130_v33 = vld [vmem:[%s5221_s2 + $0xb8] sm:$0xff] }
 0x73c   :  { %v4230_v34 = vpop.f32.mrf.mxu0 }
 0x73e   :  { %v1145_v35 = vpop.f32.mrf.mxu0 }
 0x73f   :  { %4233 = vmatprep.mubr.msk.f32.mxu0 %vm27_vm0, %v1145_v35  ;;  %v128_v35 = vld [vmem:[%s5221_s2 + $0xa8] sm:$0xff] }
 0x740   :  { %4234 = vmatmul.mubr.msk.f32.vlgmr.msra.gmra.mxu0 %vm27_vm0, %v4230_v34  ;;  %v129_v34 = vld [vmem:[%s5221_s2 + $0xb0] sm:$0xff] }
 0x788   :  { %v1346_v37 = vpop.xlane.xlu1 %1345 }
 0x789   :  { %4483 = vrcp.f32 %v1346_v37  ;;  %v127_v37 = vld [vmem:[%s5221_s2 + $0xa0] sm:$0xff] }
 0x78a   :  { %v1343_v38 = vpop.xlane.xlu0 %1342 }
 0x78b   :  { %4485 = vrcp.f32 %v1343_v38  ;;  %v3868_v38 = vld [vmem:[%s5221_s2 + $0xe4] ss:$0 sm:$0xff] }
 0x78c   :  { %v1352_v36 = vpop.permute.xlu1 %1351 }
 0x78e   :  { %v1354_v39 = vpop.permute.xlu0 %1353 }
 0x78f   :  { %4243 = vmatprep.subr.mxu0 %v1354_v39 }
 0x790   :  { %4244 = vmatpush3.msra.mxu0 %v1354_v39 }
 0x791   :  { %4245 = vmatprep.subr.mxu0 %v1352_v36 }
 0x792   :  { %4246 = vmatpush3.msra.mxu0 %v1352_v36 }
 0x793   :  { %4250 = vmatprep.subr.mxu0 %v1438_v46 }
 0x796   :  { %v4484_v42 = vpop.eup %4483 }
 0x797   :  { %v1350_v45 = vmul.f32 %v4484_v42, %v4480_v24  ;;  %v3867_v24 = vld [vmem:[%s5221_s2 + $0xe7] ss:$0 sm:$0xff] }
 0x798   :  { %v4486_v43 = vpop.eup %4485 }
 0x799   :  { %v1349_v44 = vmul.f32 %v4486_v43, %v4482_v26 }
 0x79b   :  { %4247 = vmatprep.mubr.msk.f32.mxu0 %vm476_vm2, %v1349_v44 }
 0x79c   :  { %4248 = vmatmul.mubr.msk.f32.vlgmr.msra.gmra.mxu0 %vm476_vm2, %v1350_v45 }
 0x79d   :  { %4251 = vmatpush3.msra.mxu0 %v1438_v46 }
 0x79e   :  { %4266 = vmatprep.subr.mxu0 %v134_v28 }
 0x800   :  { %v4235_v47 = vpop.f32.mrf.mxu0 }
 0x801   :  { %v1237_v48 = vadd.f32 %v4235_v47, %v953_v32  ;;  %v131_v32 = vld [vmem:[%s5221_s2 + $0xc0] sm:$0xff] }
 0x802   :  { %v1227_v49 = vpop.f32.mrf.mxu0 }
 0x803   :  { %v1236_v54 = vadd.f32 %v1227_v49, %v952_v52 }
 0x85c   :  { %v4249_v31 = vpop.f32.mrf.mxu0 }
 0x85e   :  { %v1429_v50 = vpop.f32.mrf.mxu0 }
 0x85f   :  { %4252 = vmatprep.mubr.msk.f32.mxu0 %vm27_vm0, %v1429_v50 }
 0x860   :  { %4253 = vmatmul.mubr.msk.f32.vlgmr.msra.gmra.mxu0 %vm27_vm0, %v4249_v31 }
 0x861   :  { %4267 = vmatpush3.msra.mxu0 %v134_v28 }
 0x862   :  { %4268 = vmatprep.subr.mxu0 %v133_v29 }
 0x863   :  { %4269 = vmatpush3.msra.mxu0 %v133_v29 }
 0x864   :  { %4270 = vmatprep.subr.mxu0 %v132_v30 }
 0x865   :  { %4271 = vmatpush3.msra.mxu0 %v132_v30 }
 0x866   :  { %4272 = vmatprep.subr.mxu0 %v131_v32 }
 0x867   :  { %4273 = vmatpush3.msra.mxu0 %v131_v32  ;;  %v3871_v32 = vld [vmem:[%s5221_s2 + $0xe5] ss:$0 sm:$0xff] }
 0x868   :  { %4274 = vmatprep.subr.mxu0 %v130_v33 }
 0x869   :  { %4275 = vmatpush3.msra.mxu0 %v130_v33 }
 0x86a   :  { %4276 = vmatprep.subr.mxu0 %v129_v34 }
 0x86b   :  { %4277 = vmatpush3.msra.mxu0 %v129_v34 }
 0x86c   :  { %4278 = vmatprep.subr.mxu0 %v128_v35 }
 0x86d   :  { %4279 = vmatpush3.msra.mxu0 %v128_v35 }
 0x86e   :  { %4280 = vmatprep.subr.mxu0 %v127_v37 }
 0x86f   :  { %4281 = vmatpush3.msra.mxu0 %v127_v37 }
 0x920   :  { %v4254_v53 = vpop.f32.mrf.mxu0 }
 0x921   :  { %v1521_v55 = vadd.f32 %v4254_v53, %v1237_v48 }
 0x922   :  { %v1511_v56 = vpop.f32.mrf.mxu0 }
 0x923   :  { %v1520_v57 = vadd.f32 %v1511_v56, %v1236_v54  ;;  %v1523_v58 = vadd.f32 %v1521_v55, %v4654_v20 }
 0x925   :  { %v1527_v59 = vsel %vm149_vm1, %v1523_v58, 0.0  ;;  %v1522_v60 = vadd.f32 %v1520_v57, %v4652_v19  ;;  %v126_v19 = vld [vmem:[%s5221_s2 + $0x98] sm:$0xff] }
 0x926   :  { %1528 = vadd.xlane.f32.xlu0 %v1527_v59  ;;  %4255 = vmatprep.subr.mxu1 %v126_v19 }
 0x927   :  { %v1524_v61 = vsel %vm149_vm1, %v1522_v60, 0.0  ;;  %4256 = vmatpush3.msra.mxu1 %v126_v19 }
 0x928   :  { %1525 = vadd.xlane.f32.xlu1 %v1524_v61  ;;  %4257 = vmatprep.subr.mxu1 %v125_v7 }
 0x929   :  { %4258 = vmatpush3.msra.mxu1 %v125_v7 }
 0x92a   :  { %4259 = vmatprep.subr.mxu1 %v124_v8 }
 0x92b   :  { %4260 = vmatpush3.msra.mxu1 %v124_v8 }
 0x92c   :  { %4261 = vmatprep.subr.mxu1 %v123_v9 }
 0x92d   :  { %4262 = vmatpush3.msra.mxu1 %v123_v9 }
 0x9af   :  { %v1529_v62 = vpop.xlane.xlu0 %1528 }
 0x9b0   :  { %v1532_v63 = vmul.f32 0.03125, %v1529_v62 }
 0x9b1   :  { %v1526_v0 = vpop.xlane.xlu1 %1525 }
 0x9b2   :  { %v1534_v1 = vsub.f32 %v1523_v58, %v1532_v63  ;;  %v1531_v2 = vmul.f32 0.03125, %v1526_v0 }
 0x9b4   :  { %v1533_v3 = vsub.f32 %v1522_v60, %v1531_v2  ;;  %v1536_v4 = vmul.f32 %v1534_v1, %v1534_v1 }
 0x9b6   :  { %v1540_v5 = vsel %vm149_vm1, %v1536_v4, 0.0  ;;  %v1535_v6 = vmul.f32 %v1533_v3, %v1533_v3 }
 0x9b7   :  { %1541 = vadd.xlane.f32.xlu1 %v1540_v5 }
 0x9b8   :  { %v1537_v20 = vsel %vm149_vm1, %v1535_v6, 0.0 }
 0x9b9   :  { %1538 = vadd.xlane.f32.xlu0 %v1537_v20 }
 0xa40   :  { %v1542_v10 = vpop.xlane.xlu1 %1541 }
 0xa41   :  { %v1544_v11 = vmul.f32 0.03125, %v1542_v10 }
 0xa42   :  { %v1539_v12 = vpop.xlane.xlu0 %1538 }
 0xa43   :  { %v1546_v13 = vadd.f32 1e-05, %v1544_v11  ;;  %v1543_v14 = vmul.f32 0.03125, %v1539_v12 }
 0xa45   :  { %4487 = vrsqrt.f32 %v1546_v13  ;;  %v1545_v15 = vadd.f32 1e-05, %v1543_v14 }
 0xa47   :  { %4489 = vrsqrt.f32 %v1545_v15 }
 0xa52   :  { %v4488_v16 = vpop.eup %4487 }
 0xa53   :  { %v1550_v18 = vmul.f32 %v4488_v16, %v1534_v1 }
 0xa54   :  { %v4490_v21 = vpop.eup %4489 }
 0xa55   :  { %v1549_v22 = vmul.f32 %v4490_v21, %v1533_v3  ;;  %v1556_v23 = vmul.f32 %v3866_v17, %v1550_v18 }
 0xa57   :  { %v1555_v25 = vmul.f32 %v3866_v17, %v1549_v22  ;;  %v4862_v27 = vadd.f32 %v3867_v24, %v1556_v23 }
 0xa59   :  { %v4860_v26 = vadd.f32 %v3867_v24, %v1555_v25 }
 0xa5b   :  { %4263 = vmatprep.mubr.msk.f32.mxu1 %vm149_vm1, %v4860_v26 }
 0xa5c   :  { %4264 = vmatmul.mubr.msk.f32.vlgmr.msra.gmra.mxu1 %vm149_vm1, %v4862_v27 }
 0xb1c   :  { %v4265_v39 = vpop.f32.mrf.mxu1 }
 0xb1d   :  { %v1645_v36 = vadd.f32 %v4265_v39, %v3868_v38 }
 0xb1e   :  { %v1639_v42 = vpop.f32.mrf.mxu1 }
 0xb1f   :  { %v1651_v43 = vmul.f32 0.70710677, %v1645_v36  ;;  %v1640_v44 = vadd.f32 %v3868_v38, %v1639_v42  ;;  %v1649_v28 = vmul.f32 0.5, %v1645_v36 }
 0xb21   :  { %v1653_v45 = vand.u32 2147483647, %v1651_v43  ;;  %v1650_v46 = vmul.f32 0.70710677, %v1640_v44  ;;  %vm1693_vm3 = vcmp.ge.f32.partialorder %v1651_v43, 0.0  ;;  %v1648_v24 = vmul.f32 0.5, %v1640_v44 }
 0xb23   :  { %v1655_v47 = vmul.f32 0.3275911, %v1653_v45  ;;  %v1652_v48 = vand.u32 2147483647, %v1650_v46  ;;  %v1681_v51 = vsub.f32 0.0, %v1653_v45  ;;  %vm1692_vm4 = vcmp.ge.f32.partialorder %v1650_v46, 0.0 }
 0xb25   :  { %v1657_v49 = vadd.f32 1.0, %v1655_v47  ;;  %v1654_v31 = vmul.f32 0.3275911, %v1652_v48  ;;  %v1680_v52 = vsub.f32 0.0, %v1652_v48  ;;  %v1683_v53 = vmul.f32 %v1681_v51, %v1653_v45  ;;  %v3887_v51 = vld [vmem:[%s5221_s2 + $0x148] sm:$0xff] }
 0xb26   :  { %4307 = vmatprep.subr.mxu0 %v3887_v51 }
 0xb27   :  { %4491 = vrcp.f32 %v1657_v49  ;;  %v1656_v50 = vadd.f32 1.0, %v1654_v31  ;;  %v1682_v55 = vmul.f32 %v1680_v52, %v1652_v48  ;;  %v1686_v57 = vmul.f32 1.442695, %v1683_v53  ;;  %v3878_v52 = vld [vmem:[%s5221_s2 + $0x100] sm:$0xff] }
 0xb28   :  { %v3886_v53 = vld [vmem:[%s5221_s2 + $0x140] sm:$0xff] }
 0xb29   :  { %4493 = vrcp.f32 %v1656_v50  ;;  %v1684_v61 = vmul.f32 1.442695, %v1682_v55  ;;  %v3885_v55 = vld [vmem:[%s5221_s2 + $0x138] sm:$0xff] }
 0xb2a   :  { %4495 = vpow2.f32 %v1686_v57  ;;  %v3884_v57 = vld [vmem:[%s5221_s2 + $0x130] sm:$0xff] }
 0xb2b   :  { %4497 = vpow2.f32 %v1684_v61 }
 0xb34   :  { %v4492_v54 = vpop.eup %4491 }
 0xb35   :  { %v1663_v56 = vmul.f32 1.0614054, %v4492_v54 }
 0xb36   :  { %v4494_v58 = vpop.eup %4493 }
 0xb37   :  { %v1665_v59 = vadd.f32 -1.4531521, %v1663_v56  ;;  %v1662_v60 = vmul.f32 1.0614054, %v4494_v58  ;;  %v4496_v9 = vpop.eup %4495  ;;  %v3876_v56 = vld [vmem:[%s5221_s2 + $0xf0] sm:$0xff] }
 0xb38   :  { %v4498_v13 = vpop.eup %4497 }
 0xb39   :  { %v1667_v62 = vmul.f32 %v4492_v54, %v1665_v59  ;;  %v1664_v63 = vadd.f32 -1.4531521, %v1662_v60 }
 0xb3b   :  { %v1669_v0 = vadd.f32 1.4214138, %v1667_v62  ;;  %v1666_v1 = vmul.f32 %v4494_v58, %v1664_v63 }
 0xb3d   :  { %v1671_v2 = vmul.f32 %v4492_v54, %v1669_v0  ;;  %v1668_v3 = vadd.f32 1.4214138, %v1666_v1 }
 0xb3f   :  { %v1673_v4 = vadd.f32 -0.28449672, %v1671_v2  ;;  %v1670_v5 = vmul.f32 %v4494_v58, %v1668_v3  ;;  %v3874_v2 = vld [vmem:[%s5221_s2 + $0xe8] ss:$0 sm:$0xff] }
 0xb41   :  { %v1675_v6 = vmul.f32 %v4492_v54, %v1673_v4  ;;  %v1672_v20 = vadd.f32 -0.28449672, %v1670_v5 }
 0xb43   :  { %v1677_v19 = vadd.f32 0.2548296, %v1675_v6  ;;  %v1674_v7 = vmul.f32 %v4494_v58, %v1672_v20  ;;  %v3875_v20 = vld [vmem:[%s5221_s2 + $0xe9] ss:$0 sm:$0xff] }
 0xb45   :  { %v1679_v8 = vmul.f32 %v4492_v54, %v1677_v19  ;;  %v1676_v10 = vadd.f32 0.2548296, %v1674_v7  ;;  %v3877_v54 = vld [vmem:[%s5221_s2 + $0xf8] sm:$0xff] }
 0xb47   :  { %v1689_v11 = vmul.f32 %v4496_v9, %v1679_v8  ;;  %v1678_v12 = vmul.f32 %v4494_v58, %v1676_v10  ;;  %v3883_v58 = vld [vmem:[%s5221_s2 + $0x128] sm:$0xff]  ;;  %v3882_v9 = vld [vmem:[%s5221_s2 + $0x120] sm:$0xff]  ;;  %v3881_v10 = vld [vmem:[%s5221_s2 + $0x118] sm:$0xff] }
 0xb49   :  { %v1691_v14 = vsub.f32 1.0, %v1689_v11  ;;  %v1688_v15 = vmul.f32 %v4498_v13, %v1678_v12  ;;  %v3880_v11 = vld [vmem:[%s5221_s2 + $0x110] sm:$0xff] }
 0xb4a   :  { %v3916_v12 = vld [vmem:[%s5221_s2 + $0x1d2] ss:$0 sm:$0xff] }
 0xb4b   :  { %v1695_v16 = vsub.f32 0.0, %v1691_v14  ;;  %v1690_v17 = vsub.f32 1.0, %v1688_v15 }
 0xb4d   :  { %v1697_v18 = vsel %vm1693_vm3, %v1691_v14, %v1695_v16  ;;  %v1694_v21 = vsub.f32 0.0, %v1690_v17  ;;  %v3910_v16 = vld [vmem:[%s5221_s2 + $0x1d0] ss:$0 sm:$0xff] }
 0xb4e   :  { %v1699_v22 = vadd.f32 1.0, %v1697_v18 }
 0xb4f   :  { %v1696_v23 = vsel %vm1692_vm4, %v1690_v17, %v1694_v21 }
 0xb50   :  { %v1698_v25 = vadd.f32 1.0, %v1696_v23  ;;  %v1701_v30 = vmul.f32 %v1699_v22, %v1649_v28  ;;  %v3913_v23 = vld [vmem:[%s5221_s2 + $0x1d1] ss:$0 sm:$0xff] }
 0xb52   :  { %v1700_v29 = vmul.f32 %v1698_v25, %v1648_v24 }
 0xb54   :  { %4282 = vmatprep.mubr.msk.f32.mxu0 %vm1706_vm5, %v1700_v29 }
 0xb55   :  { %4283 = vmatmul.mubr.msk.f32.vlgmr.msra.gmra.mxu0 %vm1706_vm5, %v1701_v30 }
 0xb56   :  { %4308 = vmatpush3.msra.mxu0 %v3887_v51 }
 0xb57   :  { %4309 = vmatprep.subr.mxu0 %v3886_v53 }
 0xb58   :  { %4310 = vmatpush3.msra.mxu0 %v3886_v53 }
 0xb59   :  { %4311 = vmatprep.subr.mxu0 %v3885_v55 }
 0xb5a   :  { %4312 = vmatpush3.msra.mxu0 %v3885_v55 }
 0xb5b   :  { %4313 = vmatprep.subr.mxu0 %v3884_v57 }
 0xb5c   :  { %4314 = vmatpush3.msra.mxu0 %v3884_v57 }
 0xc15   :  { %v4284_v33 = vpop.f32.mrf.mxu0 }
 0xc16   :  { %v1785_v34 = vadd.f32 %v4284_v33, %v3871_v32 }
 0xc17   :  { %v1779_v35 = vpop.f32.mrf.mxu0 }
 0xc18   :  { %v1780_v37 = vadd.f32 %v3871_v32, %v1779_v35  ;;  %v1789_v38 = vadd.f32 %v1785_v34, %v4862_v27 }
 0xc1a   :  { %v1793_v39 = vsel %vm149_vm1, %v1789_v38, 0.0  ;;  %v1788_v36 = vadd.f32 %v1780_v37, %v4860_v26  ;;  %v3879_v26 = vld [vmem:[%s5221_s2 + $0x108] sm:$0xff] }
 0xc1b   :  { %1794 = vadd.xlane.f32.xlu1 %v1793_v39  ;;  %4285 = vmatprep.subr.mxu1 %v3879_v26 }
 0xc1c   :  { %v1790_v42 = vsel %vm149_vm1, %v1788_v36, 0.0  ;;  %4286 = vmatpush3.msra.mxu1 %v3879_v26 }
 0xc1d   :  { %1791 = vadd.xlane.f32.xlu0 %v1790_v42  ;;  %4287 = vmatprep.subr.mxu1 %v3878_v52 }
 0xc1e   :  { %4288 = vmatpush3.msra.mxu1 %v3878_v52 }
 0xc1f   :  { %4289 = vmatprep.subr.mxu1 %v3877_v54 }
 0xc20   :  { %4290 = vmatpush3.msra.mxu1 %v3877_v54 }
 0xc21   :  { %4291 = vmatprep.subr.mxu1 %v3876_v56 }
 0xc22   :  { %4292 = vmatpush3.msra.mxu1 %v3876_v56  ;;  %v5028_v56 = vld [vmem:[%s5220_s1 + $0x10] sm:$0xff] }
 0xc23   :  { %4296 = vmatprep.subr.mxu1 %v3883_v58 }
 0xca4   :  { %v1795_v43 = vpop.xlane.xlu1 %1794 }
 0xca5   :  { %v1797_v44 = vmul.f32 0.03125, %v1795_v43 }
 0xca6   :  { %v1792_v45 = vpop.xlane.xlu0 %1791 }
 0xca7   :  { %v1799_v46 = vsub.f32 %v1789_v38, %v1797_v44  ;;  %v1796_v47 = vmul.f32 0.03125, %v1792_v45 }
 0xca9   :  { %v1798_v48 = vsub.f32 %v1788_v36, %v1796_v47  ;;  %v1801_v49 = vmul.f32 %v1799_v46, %v1799_v46 }
 0xcab   :  { %v1805_v31 = vsel %vm149_vm1, %v1801_v49, 0.0  ;;  %v1800_v50 = vmul.f32 %v1798_v48, %v1798_v48 }
 0xcac   :  { %1806 = vadd.xlane.f32.xlu1 %v1805_v31 }
 0xcad   :  { %v1802_v27 = vsel %vm149_vm1, %v1800_v50, 0.0 }
 0xcae   :  { %1803 = vadd.xlane.f32.xlu0 %v1802_v27 }
 0xd35   :  { %v1807_v59 = vpop.xlane.xlu1 %1806 }
 0xd36   :  { %v1809_v60 = vmul.f32 0.03125, %v1807_v59 }
 0xd37   :  { %v1804_v61 = vpop.xlane.xlu0 %1803 }
 0xd38   :  { %v1811_v62 = vadd.f32 1e-05, %v1809_v60  ;;  %v1808_v63 = vmul.f32 0.03125, %v1804_v61 }
 0xd3a   :  { %4499 = vrsqrt.f32 %v1811_v62  ;;  %v1810_v0 = vadd.f32 1e-05, %v1808_v63 }
 0xd3c   :  { %4501 = vrsqrt.f32 %v1810_v0 }
 0xd47   :  { %v4500_v1 = vpop.eup %4499 }
 0xd48   :  { %v1815_v3 = vmul.f32 %v4500_v1, %v1799_v46 }
 0xd49   :  { %v4502_v4 = vpop.eup %4501 }
 0xd4a   :  { %v1814_v5 = vmul.f32 %v4502_v4, %v1798_v48  ;;  %v1821_v6 = vmul.f32 %v3874_v2, %v1815_v3 }
 0xd4c   :  { %v1820_v19 = vmul.f32 %v3874_v2, %v1814_v5  ;;  %v4941_v8 = vadd.f32 %v3875_v20, %v1821_v6 }
 0xd4e   :  { %v4939_v7 = vadd.f32 %v3875_v20, %v1820_v19 }
 0xd50   :  { %4293 = vmatprep.mubr.msk.f32.mxu1 %vm149_vm1, %v4939_v7  ;;  %4315 = vmatprep.mubr.msk.f32.mxu0 %vm149_vm1, %v4939_v7 }
 0xd51   :  { %4294 = vmatmul.mubr.msk.f32.vlgmr.msra.gmra.mxu1 %vm149_vm1, %v4941_v8  ;;  %4316 = vmatmul.mubr.msk.f32.vlgmr.msra.gmra.mxu0 %vm149_vm1, %v4941_v8 }
 0xd52   :  { %4297 = vmatpush3.msra.mxu1 %v3883_v58  ;;  %4304 = vmatprep.mubr.msk.f32.mxu1 %vm149_vm1, %v4939_v7 }
 0xd53   :  { %4298 = vmatprep.subr.mxu1 %v3882_v9 }
 0xd54   :  { %4299 = vmatpush3.msra.mxu1 %v3882_v9 }
 0xd55   :  { %4300 = vmatprep.subr.mxu1 %v3881_v10 }
 0xd56   :  { %4301 = vmatpush3.msra.mxu1 %v3881_v10 }
 0xd57   :  { %4302 = vmatprep.subr.mxu1 %v3880_v11 }
 0xd58   :  { %4303 = vmatpush3.msra.mxu1 %v3880_v11 }
 0xd59   :  { %4305 = vmatmul.mubr.msk.f32.vlgmr.msra.gmra.mxu1 %vm149_vm1, %v4941_v8 }
 0xe11   :  { %v4295_v13 = vpop.f32.mrf.mxu1  ;;  %v4317_v14 = vpop.f32.mrf.mxu0 }
 0xe12   :  { %v4967_v15 = vadd.f32 %v4317_v14, %v3916_v12  ;;  %v1945_v30 = vadd.f32 %v4295_v13, %v3910_v16 }
 0xe13   :  { %v1939_v17 = vpop.f32.mrf.mxu1  ;;  %v2097_v18 = vpop.f32.mrf.mxu0 }
 0xe14   :  { %v4972_v21 = vadd.f32 %v3910_v16, %v1939_v17  ;;  %v4974_v22 = vadd.f32 %v3916_v12, %v2097_v18  ;;  %4325 = vmatprep.subr.mxu0 %v4967_v15  ;;  %v3925_v17 = vld [vmem:[%s5221_s2 + $0x150] sm:$0xff] }
 0xe15   :  { %4326 = vmatpush3.msra.mxu0 %v4967_v15 }
 0xe16   :  { %4327 = vmatprep.subr.mxu0 %v4974_v22  ;;  %2384 = vrot.lane.b32.xlu1 %v4972_v21, %s4579_s23 }
 0xe17   :  { %4322 = vmatprep.mubr.msk.f32.mxu1 %vm27_vm0, %v4972_v21  ;;  %4328 = vmatpush3.msra.mxu0 %v4974_v22 }
 0xe18   :  { %4332 = vmatprep.subr.mxu0 %v3925_v17 }
 0xe19   :  { %v4306_v24 = vpop.f32.mrf.mxu1 }
 0xe1a   :  { %v2024_v25 = vadd.f32 %v4306_v24, %v3913_v23 }
 0xe1b   :  { %v2018_v28 = vpop.f32.mrf.mxu1 }
 0xe1c   :  { %v2019_v29 = vadd.f32 %v3913_v23, %v2018_v28  ;;  %2390 = vrot.lane.b32.xlu0 %v2024_v25, %s4579_s23  ;;  %4318 = vmatprep.subr.msk.mxu1 %vm27_vm0, %v2024_v25 }
 0xe1d   :  { %4319 = vmatpush3.xpose.msk.msra.mxu1 %vm27_vm0, %v2024_v25 }
 0xe1e   :  { %4320 = vmatprep.subr.msk.mxu1 %vm27_vm0, %v2019_v29  ;;  %2388 = vrot.lane.b32.xlu1 %v2019_v29, %s4579_s23 }
 0xe21   :  { %4321 = vmatpush3.xpose.msk.msra.mxu1 %vm27_vm0, %v2019_v29 }
 0xe22   :  { %2386 = vrot.lane.b32.xlu1 %v1945_v30, %s4579_s23 }
 0xe24   :  { %4323 = vmatmul.mubr.msk.f32.vlgmr.msra.gmra.mxu1 %vm27_vm0, %v1945_v30 }
 0xe88   :  { %v2385_v32 = vpop.permute.xlu1 %2384 }
 0xe89   :  { %4341 = vmatprep.mubr.msk.f32.mxu1 %vm27_vm0, %v2385_v32 }
 0xe8e   :  { %v2391_v33 = vpop.permute.xlu0 %2390 }
 0xe8f   :  { %4337 = vmatprep.subr.msk.mxu1 %vm27_vm0, %v2391_v33 }
 0xe90   :  { %v2389_v34 = vpop.permute.xlu1 %2388  ;;  %4338 = vmatpush3.xpose.msk.msra.mxu1 %vm27_vm0, %v2391_v33 }
 0xe91   :  { %4339 = vmatprep.subr.msk.mxu1 %vm27_vm0, %v2389_v34 }
 0xe94   :  { %4340 = vmatpush3.xpose.msk.msra.mxu1 %vm27_vm0, %v2389_v34  ;;  %v2387_v35 = vpop.permute.xlu1 %2386 }
 0xe97   :  { %4342 = vmatmul.mubr.msk.f32.vlgmr.msra.gmra.mxu1 %vm27_vm0, %v2387_v35 }
 0xee4   :  { %v4324_v37 = vpop.f32.mrf.mxu1 }
 0xee5   :  { %v2190_v38 = vadd.f32 %v4324_v37, %v4726_v41  ;;  %v5012_v41 = vld [vmem:[%s5220_s1 + $0x18] sm:$0xff] }
 0xee6   :  { %v2184_v39 = vpop.f32.mrf.mxu1 }
 0xee7   :  { %v2185_v36 = vadd.f32 %v2184_v39, %v4721_v40  ;;  %v2196_v42 = vsel %vm476_vm2, %v2190_v38, -inf }
 0xee8   :  { %2197 = vmax.xlane.f32.xlu1 %v2196_v42 }
 0xee9   :  { %v2193_v43 = vsel %vm476_vm2, %v2185_v36, -inf }
 0xeea   :  { %2194 = vmax.xlane.f32.xlu0 %v2193_v43  ;;  %v3935_v43 = vld [vmem:[%s5221_s2 + $0x158] sm:$0xff] }
 0xef9   :  { %2674 = vrot.lane.b32.xlu1 %v2019_v29, %s4580_s30 }
 0xefd   :  { %2670 = vrot.lane.b32.xlu1 %v4972_v21, %s4580_s30 }
 0xf01   :  { %2672 = vrot.lane.b32.xlu1 %v1945_v30, %s4580_s30 }
 0xf57   :  { %v4343_v44 = vpop.f32.mrf.mxu1 }
 0xf58   :  { %v2472_v40 = vadd.f32 %v5012_v41, %v4343_v44 }
 0xf59   :  { %v2466_v55 = vpop.f32.mrf.mxu1 }
 0xf5a   :  { %v2478_v45 = vsel %vm476_vm2, %v2472_v40, -inf  ;;  %v2467_v57 = vadd.f32 %v5028_v56, %v2466_v55 }
 0xf5b   :  { %2479 = vmax.xlane.f32.xlu1 %v2478_v45 }
 0xf5c   :  { %v2475_v58 = vsel %vm476_vm2, %v2467_v57, -inf }
 0xf6c   :  { %2499 = vrot.lane.b32.xlu1 %v4974_v22, %s4579_s23 }
 0xf70   :  { %2960 = vrot.lane.b32.xlu1 %v2024_v25, %s4581_s6 }
 0xf71   :  { %v2198_v46 = vpop.xlane.xlu1 %2197 }
 0xf72   :  { %v2200_v47 = vsub.f32 %v2190_v38, %v2198_v46 }
 0xf73   :  { %v2195_v48 = vpop.xlane.xlu0 %2194 }
 0xf74   :  { %v2199_v49 = vsub.f32 %v2185_v36, %v2195_v48  ;;  %2958 = vrot.lane.b32.xlu1 %v2019_v29, %s4581_s6  ;;  %v2203_v50 = vmul.f32 1.442695, %v2200_v47 }
 0xf75   :  { %v2675_v31 = vpop.permute.xlu1 %2674 }
 0xf76   :  { %v2201_v27 = vmul.f32 1.442695, %v2199_v49 }
 0xf78   :  { %4503 = vpow2.f32 %v2201_v27  ;;  %2956 = vrot.lane.b32.xlu1 %v1945_v30, %s4581_s6 }
 0xf79   :  { %v2671_v26 = vpop.permute.xlu1 %2670  ;;  %4505 = vpow2.f32 %v2203_v50 }
 0xf7a   :  { %4360 = vmatprep.mubr.msk.f32.mxu1 %vm27_vm0, %v2671_v26 }
 0xf7d   :  { %v2673_v59 = vpop.permute.xlu1 %2672 }
 0xf85   :  { %v4504_v51 = vpop.eup %4503 }
 0xf86   :  { %v2205_v52 = vsel %vm476_vm2, %v4504_v51, 0.0  ;;  %v4506_v53 = vpop.eup %4505 }
 0xf87   :  { %2206 = vadd.xlane.f32.xlu0 %v2205_v52  ;;  %v2208_v54 = vsel %vm476_vm2, %v4506_v53, 0.0 }
 0xf8b   :  { %2209 = vadd.xlane.f32.xlu0 %v2208_v54 }
 0xfa1   :  { %2676 = vrot.lane.b32.xlu0 %v2024_v25, %s4580_s30 }
 0xfc0   :  { %2476 = vmax.xlane.f32.xlu0 %v2475_v58 }
 0xfe4   :  { %v2480_v60 = vpop.xlane.xlu1 %2479 }
 0xfe5   :  { %v2482_v61 = vsub.f32 %v2472_v40, %v2480_v60 }
 0xfe7   :  { %v2485_v62 = vmul.f32 1.442695, %v2482_v61 }
 0xfe8   :  { %v2500_v3 = vpop.permute.xlu1 %2499 }
 0xfe9   :  { %4507 = vpow2.f32 %v2485_v62 }
 0xfec   :  { %v2961_v5 = vpop.permute.xlu1 %2960 }
 0xff0   :  { %v2959_v9 = vpop.permute.xlu1 %2958 }
 0xff4   :  { %v2957_v37 = vpop.permute.xlu1 %2956 }
 0xff6   :  { %v5032_v63 = vpop.eup %4507 }
 0xff7   :  { %v2490_v0 = vsel %vm476_vm2, %v5032_v63, 0.0 }
 0xff8   :  { %2491 = vadd.xlane.f32.xlu0 %v2490_v0 }
0x1010   :  { %v2207_v1 = vpop.xlane.xlu0 %2206 }
0x1011   :  { %4509 = vrcp.f32 %v2207_v1 }
0x1014   :  { %v2210_v2 = vpop.xlane.xlu0 %2209 }
0x1015   :  { %4511 = vrcp.f32 %v2210_v2 }
0x1018   :  { %v2677_v4 = vpop.permute.xlu0 %2676 }
0x1019   :  { %4356 = vmatprep.subr.msk.mxu1 %vm27_vm0, %v2677_v4 }
0x101a   :  { %4357 = vmatpush3.xpose.msk.msra.mxu1 %vm27_vm0, %v2677_v4 }
0x101b   :  { %4358 = vmatprep.subr.msk.mxu1 %vm27_vm0, %v2675_v31 }
0x101e   :  { %v4510_v6 = vpop.eup %4509  ;;  %4359 = vmatpush3.xpose.msk.msra.mxu1 %vm27_vm0, %v2675_v31 }
0x101f   :  { %4375 = vmatprep.subr.msk.mxu1 %vm27_vm0, %v2961_v5  ;;  %v2213_v20 = vmul.f32 %v4510_v6, %v4504_v51 }
0x1021   :  { %4329 = vmatprep.mubr.msk.f32.mxu0 %vm476_vm2, %v2213_v20  ;;  %4361 = vmatmul.mubr.msk.f32.vlgmr.msra.gmra.mxu1 %vm27_vm0, %v2673_v59 }
0x1022   :  { %v4512_v19 = vpop.eup %4511  ;;  %4376 = vmatpush3.xpose.msk.msra.mxu1 %vm27_vm0, %v2961_v5 }
0x1023   :  { %4377 = vmatprep.subr.msk.mxu1 %vm27_vm0, %v2959_v9  ;;  %v2214_v10 = vmul.f32 %v4512_v19, %v4506_v53 }
0x1025   :  { %4330 = vmatmul.mubr.msk.f32.vlgmr.msra.gmra.mxu0 %vm476_vm2, %v2214_v10 }
0x1026   :  { %4378 = vmatpush3.xpose.msk.msra.mxu1 %vm27_vm0, %v2959_v9  ;;  %4333 = vmatpush3.msra.mxu0 %v3925_v17 }
0x1049   :  { %v2477_v11 = vpop.xlane.xlu0 %2476 }
0x104a   :  { %v2481_v12 = vsub.f32 %v2467_v57, %v2477_v11 }
0x104c   :  { %v2483_v13 = vmul.f32 1.442695, %v2481_v12 }
0x104e   :  { %4513 = vpow2.f32 %v2483_v13  ;;  %v3944_v13 = vld [vmem:[%s5221_s2 + $0x160] sm:$0xff] }
0x105b   :  { %v4514_v14 = vpop.eup %4513 }
0x105c   :  { %v2487_v16 = vsel %vm476_vm2, %v4514_v14, 0.0 }
0x105d   :  { %2488 = vadd.xlane.f32.xlu0 %v2487_v16 }
0x1073   :  { %2501 = vrot.lane.b32.xlu0 %v4967_v15, %s4579_s23 }
0x1077   :  { %2954 = vrot.lane.b32.xlu0 %v4972_v21, %s4581_s6 }
0x1081   :  { %v2492_v23 = vpop.xlane.xlu0 %2491 }
0x1082   :  { %4515 = vrcp.f32 %v2492_v23 }
0x108f   :  { %v4516_v38 = vpop.eup %4515 }
0x1090   :  { %v2496_v42 = vmul.f32 %v4516_v38, %v5032_v63 }
0x10e1   :  { %v4362_v18 = vpop.f32.mrf.mxu1 }
0x10e2   :  { %v2758_v24 = vadd.f32 %v5012_v41, %v4362_v18 }
0x10e3   :  { %v2752_v25 = vpop.f32.mrf.mxu1 }
0x10e4   :  { %v2753_v28 = vadd.f32 %v5028_v56, %v2752_v25  ;;  %v2764_v29 = vsel %vm476_vm2, %v2758_v24, -inf }
0x10e5   :  { %v4331_v30 = vpop.f32.mrf.mxu0  ;;  %2765 = vmax.xlane.f32.xlu1 %v2764_v29 }
0x10e6   :  { %v2489_v32 = vpop.xlane.xlu0 %2488  ;;  %v2761_v33 = vsel %vm476_vm2, %v2753_v28, -inf }
0x10e7   :  { %4517 = vrcp.f32 %v2489_v32  ;;  %v2287_v34 = vpop.f32.mrf.mxu0  ;;  %2762 = vmax.xlane.f32.xlu0 %v2761_v33 }
0x10e8   :  { %4334 = vmatprep.mubr.msk.f32.mxu0 %vm27_vm0, %v2287_v34 }
0x10e9   :  { %4335 = vmatmul.mubr.msk.f32.vlgmr.msra.gmra.mxu0 %vm27_vm0, %v4331_v30 }
0x10ea   :  { %v2502_v21 = vpop.permute.xlu0 %2501 }
0x10eb   :  { %4344 = vmatprep.subr.mxu0 %v2502_v21 }
0x10ec   :  { %4345 = vmatpush3.msra.mxu0 %v2502_v21  ;;  %v3953_v21 = vld [vmem:[%s5221_s2 + $0x168] sm:$0xff] }
0x10ed   :  { %4346 = vmatprep.subr.mxu0 %v2500_v3 }
0x10ee   :  { %4347 = vmatpush3.msra.mxu0 %v2500_v3  ;;  %v2955_v35 = vpop.permute.xlu0 %2954 }
0x10ef   :  { %4379 = vmatprep.mubr.msk.f32.mxu1 %vm27_vm0, %v2955_v35  ;;  %4351 = vmatprep.subr.mxu0 %v3935_v43 }
0x10f0   :  { %4380 = vmatmul.mubr.msk.f32.vlgmr.msra.gmra.mxu1 %vm27_vm0, %v2957_v37 }
0x10f4   :  { %v4518_v39 = vpop.eup %4517 }
0x10f5   :  { %v2495_v36 = vmul.f32 %v4518_v39, %v4514_v14  ;;  %v3928_v14 = vld [vmem:[%s5221_s2 + $0x1d3] ss:$0 sm:$0xff] }
0x10f6   :  { %2783 = vrot.lane.b32.xlu1 %v4974_v22, %s4580_s30 }
0x10f7   :  { %4348 = vmatprep.mubr.msk.f32.mxu0 %vm476_vm2, %v2495_v36 }
0x10f8   :  { %4349 = vmatmul.mubr.msk.f32.vlgmr.msra.gmra.mxu0 %vm476_vm2, %v2496_v42 }
0x10f9   :  { %4352 = vmatpush3.msra.mxu0 %v3935_v43 }
0x116e   :  { %v2766_v44 = vpop.xlane.xlu1 %2765 }
0x116f   :  { %v2768_v40 = vsub.f32 %v2758_v24, %v2766_v44 }
0x1170   :  { %v2763_v45 = vpop.xlane.xlu0 %2762 }
0x1171   :  { %v2771_v46 = vmul.f32 1.442695, %v2768_v40  ;;  %v2767_v47 = vsub.f32 %v2753_v28, %v2763_v45 }
0x1172   :  { %v2784_v63 = vpop.permute.xlu1 %2783 }
0x1173   :  { %4519 = vpow2.f32 %v2771_v46  ;;  %v2769_v48 = vmul.f32 1.442695, %v2767_v47 }
0x1175   :  { %4521 = vpow2.f32 %v2769_v48 }
0x1180   :  { %v4520_v49 = vpop.eup %4519 }
0x1181   :  { %v2776_v31 = vsel %vm476_vm2, %v4520_v49, 0.0 }
0x1182   :  { %v4522_v50 = vpop.eup %4521  ;;  %2777 = vadd.xlane.f32.xlu0 %v2776_v31 }
0x1183   :  { %v2773_v27 = vsel %vm476_vm2, %v4522_v50, 0.0 }
0x1186   :  { %2774 = vadd.xlane.f32.xlu0 %v2773_v27 }
0x119c   :  { %2785 = vrot.lane.b32.xlu0 %v4967_v15, %s4580_s30 }
0x11a9   :  { %v4336_v51 = vpop.f32.mrf.mxu0 }
0x11aa   :  { %v2383_v16 = vadd.f32 %v4336_v51, %v3928_v14 }
0x11ab   :  { %v5077_v55 = vpop.f32.mrf.mxu0 }
0x11ac   :  { %v2382_v35 = vadd.f32 %v3928_v14, %v5077_v55  ;;  %v3897_v14 = vld [vmem:[%s5221_s2 + $0x1b8] sm:$0xff] }
0x11b0   :  { %v4381_v26 = vpop.f32.mrf.mxu1 }
0x11b1   :  { %v3042_v57 = vadd.f32 %v5012_v41, %v4381_v26 }
0x11b2   :  { %v3036_v52 = vpop.f32.mrf.mxu1 }
0x11b3   :  { %v3037_v53 = vadd.f32 %v5028_v56, %v3036_v52  ;;  %v3048_v60 = vsel %vm476_vm2, %v3042_v57, -inf }
0x11b5   :  { %v3045_v54 = vsel %vm476_vm2, %v3037_v53, -inf }
0x11b6   :  { %3046 = vmax.xlane.f32.xlu1 %v3045_v54 }
0x11b8   :  { %v4350_v58 = vpop.f32.mrf.mxu0 }
0x11ba   :  { %v2577_v59 = vpop.f32.mrf.mxu0 }
0x11bb   :  { %4353 = vmatprep.mubr.msk.f32.mxu0 %vm27_vm0, %v2577_v59  ;;  %3049 = vmax.xlane.f32.xlu0 %v3048_v60  ;;  %v3890_v59 = vld [vmem:[%s5221_s2 + $0x180] sm:$0xff]  ;;  %v3889_v60 = vld [vmem:[%s5221_s2 + $0x178] sm:$0xff] }
0x11bc   :  { %4354 = vmatmul.mubr.msk.f32.vlgmr.msra.gmra.mxu0 %vm27_vm0, %v4350_v58 }
0x120b   :  { %v2778_v61 = vpop.xlane.xlu0 %2777 }
0x120c   :  { %4523 = vrcp.f32 %v2778_v61  ;;  %v3888_v61 = vld [vmem:[%s5221_s2 + $0x170] sm:$0xff] }
0x120f   :  { %v2775_v62 = vpop.xlane.xlu0 %2774 }
0x1210   :  { %4525 = vrcp.f32 %v2775_v62 }
0x1213   :  { %v2786_v56 = vpop.permute.xlu0 %2785 }
0x1214   :  { %4363 = vmatprep.subr.mxu0 %v2786_v56 }
0x1215   :  { %4364 = vmatpush3.msra.mxu0 %v2786_v56 }
0x1216   :  { %4365 = vmatprep.subr.mxu0 %v2784_v63 }
0x1217   :  { %4366 = vmatpush3.msra.mxu0 %v2784_v63 }
0x1218   :  { %4370 = vmatprep.subr.mxu0 %v3944_v13 }
0x1219   :  { %v4524_v41 = vpop.eup %4523 }
0x121a   :  { %v2782_v2 = vmul.f32 %v4524_v41, %v4520_v49 }
0x121d   :  { %v4526_v0 = vpop.eup %4525 }
0x121e   :  { %v2781_v1 = vmul.f32 %v4526_v0, %v4522_v50 }
0x1220   :  { %4367 = vmatprep.mubr.msk.f32.mxu0 %vm476_vm2, %v2781_v1 }
0x1221   :  { %4368 = vmatmul.mubr.msk.f32.vlgmr.msra.gmra.mxu0 %vm476_vm2, %v2782_v2 }
0x1222   :  { %4371 = vmatpush3.msra.mxu0 %v3944_v13  ;;  %v3898_v13 = vld [vmem:[%s5221_s2 + $0x1c0] sm:$0xff] }
0x123f   :  { %v3047_v3 = vpop.xlane.xlu1 %3046 }
0x1240   :  { %v3051_v4 = vsub.f32 %v3037_v53, %v3047_v3  ;;  %v3956_v3 = vld [vmem:[%s5221_s2 + $0x1d6] ss:$0 sm:$0xff] }
0x1242   :  { %v3053_v5 = vmul.f32 1.442695, %v3051_v4 }
0x1244   :  { %4527 = vpow2.f32 %v3053_v5  ;;  %v3050_v6 = vpop.xlane.xlu0 %3049 }
0x1245   :  { %v3052_v20 = vsub.f32 %v3042_v57, %v3050_v6 }
0x1247   :  { %v3055_v19 = vmul.f32 1.442695, %v3052_v20 }
0x1249   :  { %4529 = vpow2.f32 %v3055_v19  ;;  %v3957_v19 = vld [vmem:[%s5221_s2 + $0x1d7] ss:$0 sm:$0xff] }
0x1251   :  { %v4528_v9 = vpop.eup %4527 }
0x1252   :  { %v3057_v10 = vsel %vm476_vm2, %v4528_v9, 0.0 }
0x1253   :  { %3058 = vadd.xlane.f32.xlu0 %v3057_v10 }
0x1256   :  { %v4530_v11 = vpop.eup %4529 }
0x1257   :  { %v3060_v12 = vsel %vm476_vm2, %v4530_v11, 0.0 }
0x1258   :  { %3061 = vadd.xlane.f32.xlu1 %v3060_v12  ;;  %v3899_v12 = vld [vmem:[%s5221_s2 + $0x1c8] sm:$0xff] }
0x1269   :  { %3069 = vrot.lane.b32.xlu0 %v4967_v15, %s4581_s6  ;;  %3067 = vrot.lane.b32.xlu1 %v4974_v22, %s4581_s6  ;;  %s3813_s6 = sshll.u32 %s4584_s15, 4  ;;  %s3814_s6 = int_to_ptr.vmem [resolvable:$true] %s3813_s6 }
0x126a   :  { %s4557_s16 = scalar_lea.vmem %s3814_s6, 32  ;;  %p4562_p1 = scmp.lt.s32.totalorder %s3814_s6, %s3814_s6 }
0x126b   :  { %p4558_p0 = scmp.ne.s32.totalorder %s3814_s6, %s4557_s16  ;;  %p4563_p2 = scmp.lt.s32.totalorder %s4557_s16, %s4557_s16 }
0x126d   :  { %p4564_p3 = por %p4563_p2, %p4562_p1 }
0x126f   :  { %p4565_p4 = pnand %p4564_p3, %p4558_p0 }
0x127c   :  { %v4355_v17 = vpop.f32.mrf.mxu0 }
0x127d   :  { %v2669_v18 = vadd.f32 %v4355_v17, %v2383_v16  ;;  %v3896_v16 = vld [vmem:[%s5221_s2 + $0x1b0] sm:$0xff]  ;;  %v3895_v17 = vld [vmem:[%s5221_s2 + $0x1a8] sm:$0xff] }
0x127e   :  { %v2659_v24 = vpop.f32.mrf.mxu0 }
0x127f   :  { %v2668_v38 = vadd.f32 %v2659_v24, %v2382_v35  ;;  %v3892_v24 = vld [vmem:[%s5221_s2 + $0x190] sm:$0xff] }
0x12dc   :  { %v3059_v23 = vpop.xlane.xlu0 %3058 }
0x12dd   :  { %4531 = vrcp.f32 %v3059_v23  ;;  %v3893_v23 = vld [vmem:[%s5221_s2 + $0x198] sm:$0xff] }
0x12e0   :  { %v3070_v25 = vpop.permute.xlu0 %3069 }
0x12e1   :  { %v4369_v28 = vpop.f32.mrf.mxu0  ;;  %v3062_v29 = vpop.xlane.xlu1 %3061  ;;  %4382 = vmatprep.subr.mxu0 %v3070_v25 }
0x12e2   :  { %4533 = vrcp.f32 %v3062_v29 }
0x12e3   :  { %v2861_v30 = vpop.f32.mrf.mxu0 }
0x12e4   :  { %4372 = vmatprep.mubr.msk.f32.mxu0 %vm27_vm0, %v2861_v30 }
0x12e5   :  { %4373 = vmatmul.mubr.msk.f32.vlgmr.msra.gmra.mxu0 %vm27_vm0, %v4369_v28  ;;  %v3068_v15 = vpop.permute.xlu1 %3067 }
0x12e6   :  { %4383 = vmatpush3.msra.mxu0 %v3070_v25  ;;  %v3958_v25 = vld [vmem:[%s5221_s2 + $0x1d4] ss:$0 sm:$0xff] }
0x12e7   :  { %4384 = vmatprep.subr.mxu0 %v3068_v15 }
0x12e8   :  { %4385 = vmatpush3.msra.mxu0 %v3068_v15 }
0x12e9   :  { %4389 = vmatprep.subr.mxu0 %v3953_v21 }
0x12ea   :  { %v4532_v22 = vpop.eup %4531 }
0x12eb   :  { %v3065_v32 = vmul.f32 %v4532_v22, %v4528_v9 }
0x12ed   :  { %4386 = vmatprep.mubr.msk.f32.mxu0 %vm476_vm2, %v3065_v32 }
0x12ef   :  { %v4534_v33 = vpop.eup %4533 }
0x12f0   :  { %v3066_v34 = vmul.f32 %v4534_v33, %v4530_v11 }
0x12f2   :  { %4387 = vmatmul.mubr.msk.f32.vlgmr.msra.gmra.mxu0 %vm476_vm2, %v3066_v34 }
0x12f3   :  { %4390 = vmatpush3.msra.mxu0 %v3953_v21 }
0x12f4   :  { %4405 = vmatprep.subr.mxu0 %v3899_v12 }
0x13a5   :  { %v4374_v37 = vpop.f32.mrf.mxu0 }
0x13a6   :  { %v2953_v39 = vadd.f32 %v4374_v37, %v2669_v18  ;;  %v3894_v18 = vld [vmem:[%s5221_s2 + $0x1a0] sm:$0xff] }
0x13a7   :  { %v2943_v36 = vpop.f32.mrf.mxu0 }
0x13a8   :  { %v2952_v42 = vadd.f32 %v2943_v36, %v2668_v38 }
0x13b2   :  { %v4388_v43 = vpop.f32.mrf.mxu0 }
0x13b4   :  { %v3145_v44 = vpop.f32.mrf.mxu0 }
0x13b5   :  { %4391 = vmatprep.mubr.msk.f32.mxu0 %vm27_vm0, %v3145_v44 }
0x13b6   :  { %4392 = vmatmul.mubr.msk.f32.vlgmr.msra.gmra.mxu0 %vm27_vm0, %v4388_v43 }
0x13b7   :  { %4406 = vmatpush3.msra.mxu0 %v3899_v12 }
0x13b8   :  { %4407 = vmatprep.subr.mxu0 %v3898_v13 }
0x13b9   :  { %4408 = vmatpush3.msra.mxu0 %v3898_v13  ;;  %v3961_v13 = vld [vmem:[%s5221_s2 + $0x1d5] ss:$0 sm:$0xff] }
0x13ba   :  { %4409 = vmatprep.subr.mxu0 %v3897_v14 }
0x13bb   :  { %4410 = vmatpush3.msra.mxu0 %v3897_v14 }
0x13bc   :  { %4411 = vmatprep.subr.mxu0 %v3896_v16 }
0x13bd   :  { %4412 = vmatpush3.msra.mxu0 %v3896_v16 }
0x13be   :  { %4413 = vmatprep.subr.mxu0 %v3895_v17 }
0x13bf   :  { %4414 = vmatpush3.msra.mxu0 %v3895_v17 }
0x13c0   :  { %4415 = vmatprep.subr.mxu0 %v3894_v18 }
0x13c1   :  { %4416 = vmatpush3.msra.mxu0 %v3894_v18 }
0x13c2   :  { %4417 = vmatprep.subr.mxu0 %v3893_v23 }
0x13c3   :  { %4418 = vmatpush3.msra.mxu0 %v3893_v23 }
0x13c4   :  { %4419 = vmatprep.subr.mxu0 %v3892_v24 }
0x13c5   :  { %4420 = vmatpush3.msra.mxu0 %v3892_v24 }
0x1476   :  { %v4393_v40 = vpop.f32.mrf.mxu0 }
0x1477   :  { %v3237_v45 = vadd.f32 %v4393_v40, %v2953_v39 }
0x1478   :  { %v3227_v46 = vpop.f32.mrf.mxu0 }
0x1479   :  { %v3236_v47 = vadd.f32 %v3227_v46, %v2952_v42  ;;  %v3239_v48 = vadd.f32 %v3237_v45, %v4941_v8 }
0x147b   :  { %v3243_v49 = vsel %vm149_vm1, %v3239_v48, 0.0  ;;  %v3238_v31 = vadd.f32 %v3236_v47, %v4939_v7  ;;  %v3891_v7 = vld [vmem:[%s5221_s2 + $0x188] sm:$0xff] }
0x147c   :  { %3244 = vadd.xlane.f32.xlu0 %v3243_v49  ;;  %4394 = vmatprep.subr.mxu1 %v3891_v7 }
0x147d   :  { %v3240_v50 = vsel %vm149_vm1, %v3238_v31, 0.0  ;;  %4395 = vmatpush3.msra.mxu1 %v3891_v7 }
0x147e   :  { %3241 = vadd.xlane.f32.xlu1 %v3240_v50  ;;  %4396 = vmatprep.subr.mxu1 %v3890_v59 }
0x147f   :  { %4397 = vmatpush3.msra.mxu1 %v3890_v59 }
0x1480   :  { %4398 = vmatprep.subr.mxu1 %v3889_v60 }
0x1481   :  { %4399 = vmatpush3.msra.mxu1 %v3889_v60 }
0x1482   :  { %4400 = vmatprep.subr.mxu1 %v3888_v61 }
0x1483   :  { %4401 = vmatpush3.msra.mxu1 %v3888_v61 }
0x1505   :  { %v3245_v27 = vpop.xlane.xlu0 %3244 }
0x1506   :  { %v3247_v26 = vmul.f32 0.03125, %v3245_v27 }
0x1507   :  { %v3242_v51 = vpop.xlane.xlu1 %3241 }
0x1508   :  { %v3249_v52 = vsub.f32 %v3239_v48, %v3247_v26  ;;  %v3246_v53 = vmul.f32 0.03125, %v3242_v51 }
0x150a   :  { %v3248_v54 = vsub.f32 %v3238_v31, %v3246_v53  ;;  %v3251_v55 = vmul.f32 %v3249_v52, %v3249_v52 }
0x150c   :  { %v3255_v57 = vsel %vm149_vm1, %v3251_v55, 0.0  ;;  %v3250_v58 = vmul.f32 %v3248_v54, %v3248_v54 }
0x150d   :  { %3256 = vadd.xlane.f32.xlu1 %v3255_v57 }
0x150e   :  { %v3252_v8 = vsel %vm149_vm1, %v3250_v58, 0.0 }
0x150f   :  { %3253 = vadd.xlane.f32.xlu0 %v3252_v8 }
0x1596   :  { %v3257_v62 = vpop.xlane.xlu1 %3256 }
0x1597   :  { %v3259_v56 = vmul.f32 0.03125, %v3257_v62 }
0x1598   :  { %v3254_v63 = vpop.xlane.xlu0 %3253 }
0x1599   :  { %v3261_v41 = vadd.f32 1e-05, %v3259_v56  ;;  %v3258_v0 = vmul.f32 0.03125, %v3254_v63 }
0x159b   :  { %4535 = vrsqrt.f32 %v3261_v41  ;;  %v3260_v1 = vadd.f32 1e-05, %v3258_v0 }
0x159d   :  { %4537 = vrsqrt.f32 %v3260_v1 }
0x15a8   :  { %v4536_v2 = vpop.eup %4535 }
0x15a9   :  { %v3265_v4 = vmul.f32 %v4536_v2, %v3249_v52 }
0x15aa   :  { %v4538_v5 = vpop.eup %4537 }
0x15ab   :  { %v3264_v6 = vmul.f32 %v4538_v5, %v3248_v54  ;;  %v3271_v20 = vmul.f32 %v3956_v3, %v3265_v4 }
0x15ad   :  { %v3270_v9 = vmul.f32 %v3956_v3, %v3264_v6  ;;  %v5133_v11 = vadd.f32 %v3957_v19, %v3271_v20 }
0x15af   :  { %v5131_v10 = vadd.f32 %v3957_v19, %v3270_v9 }
0x15b1   :  { %4402 = vmatprep.mubr.msk.f32.mxu1 %vm149_vm1, %v5131_v10 }
0x15b2   :  { %4403 = vmatmul.mubr.msk.f32.vlgmr.msra.gmra.mxu1 %vm149_vm1, %v5133_v11 }
0x1672   :  { %v4404_v28 = vpop.f32.mrf.mxu1 }
0x1673   :  { %v3360_v29 = vadd.f32 %v4404_v28, %v3958_v25 }
0x1674   :  { %v3354_v30 = vpop.f32.mrf.mxu1 }
0x1675   :  { %v3366_v15 = vmul.f32 0.70710677, %v3360_v29  ;;  %v3355_v22 = vadd.f32 %v3958_v25, %v3354_v30  ;;  %v3364_v19 = vmul.f32 0.5, %v3360_v29 }
0x1677   :  { %v3368_v32 = vand.u32 2147483647, %v3366_v15  ;;  %v3365_v33 = vmul.f32 0.70710677, %v3355_v22  ;;  %vm3408_vm6 = vcmp.ge.f32.partialorder %v3366_v15, 0.0  ;;  %v3363_v6 = vmul.f32 0.5, %v3355_v22 }
0x1679   :  { %v3370_v34 = vmul.f32 0.3275911, %v3368_v32  ;;  %v3367_v21 = vand.u32 2147483647, %v3365_v33  ;;  %v3396_v39 = vsub.f32 0.0, %v3368_v32  ;;  %vm3407_vm7 = vcmp.ge.f32.partialorder %v3365_v33, 0.0 }
0x167b   :  { %v3372_v35 = vadd.f32 1.0, %v3370_v34  ;;  %v3369_v37 = vmul.f32 0.3275911, %v3367_v21  ;;  %v3395_v36 = vsub.f32 0.0, %v3367_v21  ;;  %v3398_v42 = vmul.f32 %v3396_v39, %v3368_v32 }
0x167d   :  { %4539 = vrcp.f32 %v3372_v35  ;;  %v3371_v38 = vadd.f32 1.0, %v3369_v37  ;;  %v3397_v44 = vmul.f32 %v3395_v36, %v3367_v21  ;;  %v3401_v45 = vmul.f32 1.442695, %v3398_v42 }
0x167e   :  { %v4582_v37 = vmov 0.0  }
0x167f   :  { %4541 = vrcp.f32 %v3371_v38  ;;  %v3399_v49 = vmul.f32 1.442695, %v3397_v44  ;;  %4424 = vmatprep.subr.mxu1 %v4582_v37  ;;  %4442 = vmatprep.subr.mxu0 %v4582_v37 }
0x1680   :  { %4543 = vpow2.f32 %v3401_v45  ;;  %4428 = vmatprep.mubr.msk.f32.mxu1 %vm4583_vm8, %v4582_v37 }
0x1681   :  { %4545 = vpow2.f32 %v3399_v49 }
0x168a   :  { %v4540_v43 = vpop.eup %4539 }
0x168b   :  { %v3378_v40 = vmul.f32 1.0614054, %v4540_v43 }
0x168c   :  { %v4542_v46 = vpop.eup %4541 }
0x168d   :  { %v3380_v47 = vadd.f32 -1.4531521, %v3378_v40  ;;  %v3377_v48 = vmul.f32 1.0614054, %v4542_v46  ;;  %v4544_v59 = vpop.eup %4543  ;;  %v3964_v40 = vld [vmem:[%s5221_s2 + $0x1d8] ss:$0 sm:$0xff] }
0x168e   :  { %v4546_v56 = vpop.eup %4545 }
0x168f   :  { %v3382_v31 = vmul.f32 %v4540_v43, %v3380_v47  ;;  %v3379_v50 = vadd.f32 -1.4531521, %v3377_v48  ;;  %v3965_v47 = vld [vmem:[%s5221_s2 + $0x1d9] ss:$0 sm:$0xff] }
0x1691   :  { %v3384_v27 = vadd.f32 1.4214138, %v3382_v31  ;;  %v3381_v26 = vmul.f32 %v4542_v46, %v3379_v50 }
0x1693   :  { %v3386_v51 = vmul.f32 %v4540_v43, %v3384_v27  ;;  %v3383_v52 = vadd.f32 1.4214138, %v3381_v26  ;;  %v3542_v26 = vld [vmem:[%s5220_s1 + $0x28] sm:$0x3] }
0x1695   :  { %v3388_v53 = vadd.f32 -0.28449672, %v3386_v51  ;;  %v3385_v54 = vmul.f32 %v4542_v46, %v3383_v52  ;;  %v3619_v51 = vld [vmem:[%s5220_s1 + $0x48] sm:$0xff]  ;;  %v3618_v52 = vld [vmem:[%s5220_s1 + $0x40] sm:$0xff] }
0x1697   :  { %v3390_v55 = vmul.f32 %v4540_v43, %v3388_v53  ;;  %v3387_v57 = vadd.f32 -0.28449672, %v3385_v54  ;;  %v3617_v53 = vld [vmem:[%s5220_s1 + $0x38] sm:$0xff]  ;;  %v3616_v54 = vld [vmem:[%s5220_s1 + $0x30] sm:$0xff] }
0x1699   :  { %v3392_v58 = vadd.f32 0.2548296, %v3390_v55  ;;  %v3389_v8 = vmul.f32 %v4542_v46, %v3387_v57 }
0x169b   :  { %v3394_v7 = vmul.f32 %v4540_v43, %v3392_v58  ;;  %v3391_v60 = vadd.f32 0.2548296, %v3389_v8  ;;  %v3621_v58 = vld [vmem:[%s5220_s1 + $0x58] sm:$0xff]  ;;  %v3620_v8 = vld [vmem:[%s5220_s1 + $0x50] sm:$0xff] }
0x169d   :  { %v3404_v61 = vmul.f32 %v4544_v59, %v3394_v7  ;;  %v3393_v62 = vmul.f32 %v4542_v46, %v3391_v60  ;;  %v3967_v7 = vld [vmem:[%s5220_s1 + $0x61] ss:$0 sm:$0xff] }
0x169f   :  { %v3406_v63 = vsub.f32 1.0, %v3404_v61  ;;  %v3403_v41 = vmul.f32 %v4546_v56, %v3393_v62 }
0x16a1   :  { %v3410_v0 = vsub.f32 0.0, %v3406_v63  ;;  %v3405_v1 = vsub.f32 1.0, %v3403_v41 }
0x16a3   :  { %v3412_v2 = vsel %vm3408_vm6, %v3406_v63, %v3410_v0  ;;  %v3409_v3 = vsub.f32 0.0, %v3405_v1 }
0x16a4   :  { %v3414_v4 = vadd.f32 1.0, %v3412_v2 }
0x16a5   :  { %v3411_v5 = vsel %vm3407_vm7, %v3405_v1, %v3409_v3 }
0x16a6   :  { %v3413_v20 = vadd.f32 1.0, %v3411_v5  ;;  %v3416_v12 = vmul.f32 %v3414_v4, %v3364_v19 }
0x16a8   :  { %v3415_v9 = vmul.f32 %v3413_v20, %v3363_v6 }
0x16aa   :  { %4421 = vmatprep.mubr.msk.f32.mxu0 %vm1706_vm5, %v3415_v9 }
0x16ab   :  { %4422 = vmatmul.mubr.msk.f32.vlgmr.msra.gmra.mxu0 %vm1706_vm5, %v3416_v12 }
0x16ac   :  { %4446 = vmatprep.mubr.msk.f32.mxu0 %vm4583_vm8, %v4582_v37  ;;  %4443 = vmatpush3.msra.mxu0 %v3621_v58 }
0x16ad   :  { %4444 = vmatprep.subr.mxu0 %v4582_v37 }
0x16ae   :  { %4445 = vmatpush3.msra.mxu0 %v3620_v8 }
0x176b   :  { %v4423_v14 = vpop.f32.mrf.mxu0 }
0x176c   :  { %v3499_v16 = vadd.f32 %v4423_v14, %v3961_v13 }
0x176d   :  { %v3493_v17 = vpop.f32.mrf.mxu0 }
0x176e   :  { %v3494_v18 = vadd.f32 %v3961_v13, %v3493_v17  ;;  %v3503_v23 = vadd.f32 %v3499_v16, %v5133_v11 }
0x1770   :  { %v3507_v24 = vsel %vm149_vm1, %v3503_v23, 0.0  ;;  %v3502_v25 = vadd.f32 %v3494_v18, %v5131_v10 }
0x1771   :  { %3508 = vadd.xlane.f32.xlu0 %v3507_v24 }
0x1772   :  { %v3504_v28 = vsel %vm149_vm1, %v3502_v25, 0.0 }
0x1773   :  { %3505 = vadd.xlane.f32.xlu1 %v3504_v28 }
0x17fa   :  { %v3509_v29 = vpop.xlane.xlu0 %3508 }
0x17fb   :  { %v3511_v30 = vmul.f32 0.03125, %v3509_v29 }
0x17fc   :  { %v3506_v15 = vpop.xlane.xlu1 %3505 }
0x17fd   :  { %v3513_v22 = vsub.f32 %v3503_v23, %v3511_v30  ;;  %v3510_v32 = vmul.f32 0.03125, %v3506_v15  ;;  %v3969_v30 = vld [vmem:[%s5220_s1 + $0x62] ss:$0 sm:$0xff] }
0x17ff   :  { %v3512_v33 = vsub.f32 %v3502_v25, %v3510_v32  ;;  %v3515_v34 = vmul.f32 %v3513_v22, %v3513_v22 }
0x1801   :  { %v3519_v21 = vsel %vm149_vm1, %v3515_v34, 0.0  ;;  %v3514_v35 = vmul.f32 %v3512_v33, %v3512_v33 }
0x1802   :  { %3520 = vadd.xlane.f32.xlu0 %v3519_v21 }
0x1803   :  { %v3516_v11 = vsel %vm149_vm1, %v3514_v35, 0.0 }
0x1804   :  { %3517 = vadd.xlane.f32.xlu1 %v3516_v11 }
0x188b   :  { %v3521_v10 = vpop.xlane.xlu0 %3520 }
0x188c   :  { %v3523_v38 = vmul.f32 0.03125, %v3521_v10 }
0x188d   :  { %v3518_v39 = vpop.xlane.xlu1 %3517 }
0x188e   :  { %v3525_v36 = vadd.f32 1e-05, %v3523_v38  ;;  %v3522_v42 = vmul.f32 0.03125, %v3518_v39 }
0x1890   :  { %4547 = vrsqrt.f32 %v3525_v36  ;;  %v3524_v43 = vadd.f32 1e-05, %v3522_v42 }
0x1892   :  { %4549 = vrsqrt.f32 %v3524_v43 }
0x189d   :  { %v4548_v44 = vpop.eup %4547 }
0x189e   :  { %v3529_v45 = vmul.f32 %v4548_v44, %v3513_v22 }
0x189f   :  { %v4550_v46 = vpop.eup %4549 }
0x18a0   :  { %v3535_v48 = vmul.f32 %v3964_v40, %v3529_v45  ;;  %v3528_v49 = vmul.f32 %v4550_v46, %v3512_v33 }
0x18a2   :  { %v3541_v31 = vadd.f32 %v3965_v47, %v3535_v48  ;;  %v3534_v50 = vmul.f32 %v3964_v40, %v3528_v49 }
0x18a4   :  { %4425 = vmatpush3.msra.mxu1 %v3541_v31  ;;  %v3540_v27 = vadd.f32 %v3965_v47, %v3534_v50 }
0x18a5   :  { %4426 = vmatprep.subr.mxu1 %v4582_v37 }
0x18a6   :  { %4427 = vmatpush3.msra.mxu1 %v3540_v27 }
0x18a7   :  { %4429 = vmatmul.mubr.msk.f32.vlgmr.msra.gmra.mxu1 %vm476_vm2, %v3542_v26  ;;  %4431 = vmatprep.subr.mxu1 %v4582_v37 }
0x18a8   :  { %4432 = vmatpush3.msra.mxu1 %v3619_v51  ;;  %4439 = vmatprep.mubr.msk.f32.mxu1 %vm4583_vm8, %v4582_v37 }
0x18a9   :  { %4433 = vmatprep.subr.mxu1 %v4582_v37 }
0x18aa   :  { %4434 = vmatpush3.msra.mxu1 %v3618_v52 }
0x18ab   :  { %4435 = vmatprep.subr.mxu1 %v4582_v37 }
0x18ac   :  { %4436 = vmatpush3.msra.mxu1 %v3617_v53 }
0x18ad   :  { %4437 = vmatprep.subr.mxu1 %v4582_v37 }
0x18ae   :  { %4438 = vmatpush3.msra.mxu1 %v3616_v54 }
0x1967   :  { %v3612_v55 = vpop.f32.mrf.mxu1 }
0x1968   :  { %4440 = vmatmul.mubr.msk.f32.vlgmr.msra.gmra.mxu1 %vm149_vm1, %v3612_v55 }
0x1969   :  { %v4430_v57 = vpop.f32.mrf.mxu1 }
0x1a28   :  { %v3697_v59 = vpop.f32.mrf.mxu1 }
0x1a29   :  { %v3698_v60 = vadd.f32 %v3967_v7, %v3697_v59 }
0x1a2a   :  { %v4441_v61 = vpop.f32.mrf.mxu1 }
0x1a2b   :  { %v3702_v62 = vmul.f32 0.70710677, %v3698_v60  ;;  %v3701_v25 = vmul.f32 0.5, %v3698_v60 }
0x1a2d   :  { %v3703_v56 = vand.u32 2147483647, %v3702_v62  ;;  %vm3723_vm9 = vcmp.ge.f32.partialorder %v3702_v62, 0.0 }
0x1a2f   :  { %v3704_v63 = vmul.f32 0.3275911, %v3703_v56  ;;  %v3717_v0 = vsub.f32 0.0, %v3703_v56 }
0x1a31   :  { %v3705_v41 = vadd.f32 1.0, %v3704_v63  ;;  %v3718_v1 = vmul.f32 %v3717_v0, %v3703_v56 }
0x1a33   :  { %4551 = vrcp.f32 %v3705_v41  ;;  %v3719_v4 = vmul.f32 1.442695, %v3718_v1 }
0x1a35   :  { %4553 = vpow2.f32 %v3719_v4 }
0x1a40   :  { %v4552_v2 = vpop.eup %4551 }
0x1a41   :  { %v3708_v3 = vmul.f32 1.0614054, %v4552_v2 }
0x1a42   :  { %v4554_v16 = vpop.eup %4553 }
0x1a43   :  { %v3709_v5 = vadd.f32 -1.4531521, %v3708_v3 }
0x1a45   :  { %v3710_v6 = vmul.f32 %v4552_v2, %v3709_v5 }
0x1a47   :  { %v3711_v20 = vadd.f32 1.4214138, %v3710_v6 }
0x1a49   :  { %v3712_v19 = vmul.f32 %v4552_v2, %v3711_v20 }
0x1a4b   :  { %v3713_v9 = vadd.f32 -0.28449672, %v3712_v19 }
0x1a4d   :  { %v3714_v12 = vmul.f32 %v4552_v2, %v3713_v9 }
0x1a4f   :  { %v3715_v13 = vadd.f32 0.2548296, %v3714_v12 }
0x1a51   :  { %v3716_v14 = vmul.f32 %v4552_v2, %v3715_v13 }
0x1a53   :  { %v3721_v17 = vmul.f32 %v4554_v16, %v3716_v14 }
0x1a55   :  { %v3722_v18 = vsub.f32 1.0, %v3721_v17 }
0x1a57   :  { %v3724_v23 = vsub.f32 0.0, %v3722_v18 }
0x1a59   :  { %v3725_v24 = vsel %vm3723_vm9, %v3722_v18, %v3724_v23 }
0x1a5a   :  { %v3726_v28 = vadd.f32 1.0, %v3725_v24 }
0x1a5c   :  { %v3727_v29 = vmul.f32 %v3726_v28, %v3701_v25 }
0x1a5e   :  { %4447 = vmatmul.mubr.msk.f32.vlgmr.msra.gmra.mxu0 %vm476_vm2, %v3727_v29 }
0x1b1e   :  { %v3801_v15 = vpop.f32.mrf.mxu0 }
0x1b1f   :  { %v3802_v22 = vadd.f32 %v3969_v30, %v3801_v15 }
0x1b20   :  { %v4448_v32 = vpop.f32.mrf.mxu0 }
0x1b21   :  { %3806 = vst.msk [vmem:[#allocation2] sm:$0x3] %vm3805_vm10, %v3802_v22 }
0x1b22   :  { %4568 = shalt.err (!%p4565_p4)
}
0x1b23   :  { %3816 = dma.vmem_to_hbm [thread:$0]  %s3814_s6, 32, %s5222_s3, [#allocation3]  }
0x1b24   :  { %4577 = dma.done.wait [#allocation3], 32  }
0x1b25   :  { %4578 = vsyncadd [#allocation3], 4294967264 }
0x1b26   :  { %3820 = vsyncpa [#allocation3], 1 }

</bundles_post_ra>
